<compile_context>
chip_gen: v5e
topology: v5e:2x2
jax: 0.10.0
libtpu: 0.0.40
codegen_flags: <defaults>
</compile_context>

<pallas_src>
import jax
import jax.numpy as jnp
import numpy as np
from jax.experimental import pallas as pl
from jax.experimental.pallas import tpu as pltpu


def refinement_kernel(x_ref, w_in_ref, b_in_ref, wd_ref, bd_ref,
                      w1_ref, b1_ref, w_out_ref, b_out_ref, o_ref, fpad_ref):
    """One batch element per grid step.  All weights live fully in VMEM.

    x_ref    : (1, T, F)          input features (channels-last), f32
    w_in_ref : (F, C)             1x1 input conv  (in x out), compute dtype
    b_in_ref : (1, C)             f32
    wd_ref   : (L, 3, C, C)       dilated k=3 conv taps [prev, center, next]
    bd_ref   : (L, 1, C)          f32
    w1_ref   : (L, C, C)          per-layer 1x1 conv (in x out), compute dtype
    b1_ref   : (L, 1, C)          f32
    w_out_ref: (C, F)             output 1x1 conv (unpadded)
    b_out_ref: (1, F)             f32
    o_ref    : (1, T, F)          output block (full last dim, no padding)
    fpad_ref : (T + 2H, C)        zero-halo scratch, compute dtype
    """
    T = x_ref.shape[1]
    L = wd_ref.shape[0]
    C = w1_ref.shape[1]
    Tpad = fpad_ref.shape[0]
    H = (Tpad - T) // 2
    cdt = w_in_ref.dtype                               # MXU operand dtype

    # Zero only the halo rows; the interior is overwritten every layer.
    fpad_ref[0:H, :] = jnp.zeros((H, C), fpad_ref.dtype)
    fpad_ref[H + T:, :] = jnp.zeros((Tpad - H - T, C), fpad_ref.dtype)

    x = x_ref[0]
    f = (jnp.dot(x.astype(cdt), w_in_ref[...],
                 preferred_element_type=jnp.float32)
         + b_in_ref[...])                              # (T, C) f32

    # TODO(synk): for production L (=10) convert this static unroll into a
    # fori_loop / layer grid axis to bound vreg & VMEM live ranges.
    for l in range(L):                                 # static unroll (small L)
        d = 2 ** l
        fc = f.astype(cdt)                             # one cast per layer
        fpad_ref[H:H + T, :] = fc                      # center rows
        f_prev = fpad_ref[H - d:H - d + T, :]          # f[t - d], 0 for t <  d
        f_next = fpad_ref[H + d:H + d + T, :]          # f[t + d], 0 for t >= T-d
        # Dilated k=3 conv as three accumulating MXU matmuls (no concat/relayout).
        h = jnp.dot(f_prev, wd_ref[l, 0], preferred_element_type=jnp.float32)
        h = h + jnp.dot(fc, wd_ref[l, 1], preferred_element_type=jnp.float32)
        h = h + jnp.dot(f_next, wd_ref[l, 2], preferred_element_type=jnp.float32)
        h = jnp.maximum(h + bd_ref[l], 0.0)            # bias + ReLU (f32, VPU)
        h = (jnp.dot(h.astype(cdt), w1_ref[l],
                     preferred_element_type=jnp.float32)
             + b1_ref[l])
        # TODO(synk): Dropout is the identity in eval/inference mode; no RNG.
        f = f + h                                      # residual kept in f32

    out = (jnp.dot(f.astype(cdt), w_out_ref[...],
                   preferred_element_type=jnp.float32)
           + b_out_ref[...])                           # (T, F)
    o_ref[0] = out.astype(o_ref.dtype)


def refinement_forward(x_nct, params, *, compute_dtype=jnp.bfloat16):
    """x_nct: (N, final_dim, T) PyTorch layout. Returns (N, final_dim, T).

    compute_dtype: MXU operand dtype. bfloat16 (default) uses the native
    bf16 MXU path on all generations (f32 accumulation / ReLU / residual are
    kept either way); float32 gives exact reference numerics at the cost of
    multi-pass MXU emulation.
    """
    N, F, T = x_nct.shape
    x_ntc = jnp.transpose(x_nct, (0, 2, 1))            # (N, T, F)

    w_in = params["w_in_t"].astype(compute_dtype)      # (F, C)
    b_in = params["b_in"]                              # (1, C) f32
    wd = params["wd_taps"].astype(compute_dtype)       # (L, 3, C, C)
    bd = params["bd"]                                  # (L, 1, C) f32
    w1 = params["w1_t"].astype(compute_dtype)          # (L, C, C)
    b1 = params["b1"]                                  # (L, 1, C) f32
    w_out = params["w_out_t"].astype(compute_dtype)    # (C, F)
    b_out = params["b_out"]                            # (1, F) f32

    L = int(w1.shape[0])
    C = int(w1.shape[1])

    # Zero-halo size: largest dilation, rounded up to whole packed-sublane
    # groups (16 rows covers both f32 and bf16 layouts).
    max_d = (2 ** (L - 1)) if L > 0 else 0
    H = max(16, ((max_d + 15) // 16) * 16)
    Tpad = T + 2 * H

    def const_spec(a):
        nd = a.ndim
        return pl.BlockSpec(a.shape, lambda n, _nd=nd: (0,) * _nd)

    # VMEM budget from the actual live set: weights (assume double-buffered
    # even though their index maps are constant), double-buffered I/O blocks,
    # the shift scratch, and per-layer temporaries + headroom.
    def nbytes(a):
        return int(a.size) * int(np.dtype(a.dtype).itemsize)

    wbytes = sum(nbytes(a) for a in (w_in, b_in, wd, bd, w1, b1, w_out, b_out))
    io_itemsize = int(np.dtype(x_ntc.dtype).itemsize)
    iobytes = 2 * (T * F * io_itemsize) + 2 * (T * F * io_itemsize)
    scratch_bytes = Tpad * C * int(np.dtype(compute_dtype).itemsize)
    temp_bytes = 8 * T * C * 4                          # f, h, casts (f32/bf16)
    vmem_limit = int(max(16 << 20,
                         2 * wbytes + iobytes + scratch_bytes + temp_bytes
                         + (4 << 20)))

    # NOTE: weight BlockSpecs have constant index maps; on v7x (64 MiB VMEM)
    # with large C/L they could additionally be single-buffered via
    # pipeline_mode=pl.Buffered(1). Not needed at these sizes.
    out_ntc = pl.pallas_call(
        refinement_kernel,
        out_shape=jax.ShapeDtypeStruct((N, T, F), x_nct.dtype),
        grid_spec=pltpu.PrefetchScalarGridSpec(
            num_scalar_prefetch=0,
            grid=(N,),                                  # batch-parallel
            in_specs=[
                pl.BlockSpec((1, T, F), lambda n: (n, 0, 0)),
                const_spec(w_in), const_spec(b_in),
                const_spec(wd), const_spec(bd),
                const_spec(w1), const_spec(b1),
                const_spec(w_out), const_spec(b_out),
            ],
            out_specs=pl.BlockSpec((1, T, F), lambda n: (n, 0, 0)),
            scratch_shapes=[pltpu.VMEM((Tpad, C), compute_dtype)],
        ),
        compiler_params=pltpu.CompilerParams(
            dimension_semantics=("parallel",),
            vmem_limit_bytes=vmem_limit),
    )(x_ntc, w_in, b_in, wd, bd, w1, b1, w_out, b_out)

    return jnp.transpose(out_ntc, (0, 2, 1))           # back to (N, F, T)


# ---------------- deterministic parameter construction -----------------------

def make_params(key, final_dim, interm_dim, num_layers):
    """PyTorch-layout conv weights (deterministic) plus kernel-layout views."""
    keys = jax.random.split(key, 4 + 2 * num_layers)
    s = 0.1
    C = interm_dim

    # PyTorch layouts: Conv1d weight (out_ch, in_ch, k), bias (out_ch,)
    w_in = s * jax.random.normal(keys[0], (interm_dim, final_dim, 1), jnp.float32)
    b_in = s * jax.random.normal(keys[1], (interm_dim,), jnp.float32)
    w_out = s * jax.random.normal(keys[2], (final_dim, interm_dim, 1), jnp.float32)
    b_out = s * jax.random.normal(keys[3], (final_dim,), jnp.float32)

    wdil, bdil, w1x1, b1x1 = [], [], [], []
    for l in range(num_layers):
        k0, k1 = keys[4 + 2 * l], keys[5 + 2 * l]
        kk = jax.random.split(k0, 2)
        wdil.append(s * jax.random.normal(kk[0], (interm_dim, interm_dim, 3), jnp.float32))
        bdil.append(s * jax.random.normal(kk[1], (interm_dim,), jnp.float32))
        kk = jax.random.split(k1, 2)
        w1x1.append(s * jax.random.normal(kk[0], (interm_dim, interm_dim, 1), jnp.float32))
        b1x1.append(s * jax.random.normal(kk[1], (interm_dim,), jnp.float32))
    wdil = jnp.stack(wdil)    # (L, C_out, C_in, 3)
    bdil = jnp.stack(bdil)    # (L, C)
    w1x1 = jnp.stack(w1x1)    # (L, C_out, C_in, 1)
    b1x1 = jnp.stack(b1x1)    # (L, C)

    torch_params = dict(w_in=w_in, b_in=b_in, w_out=w_out, b_out=b_out,
                        wdil=wdil, bdil=bdil, w1x1=w1x1, b1x1=b1x1)

    # Per-tap dilated-conv weights, (L, 3, C_in, C_out): tap 0 -> f[t-d],
    # tap 1 -> f[t], tap 2 -> f[t+d] (PyTorch cross-correlation ordering).
    wd_taps = jnp.transpose(wdil, (0, 3, 2, 1))
    kernel_params = dict(
        w_in_t=jnp.transpose(w_in[:, :, 0]),                   # (F, C)  in x out
        b_in=b_in[None, :],                                    # (1, C)
        wd_taps=wd_taps,                                        # (L, 3, C, C)
        bd=bdil[:, None, :],                                   # (L, 1, C)
        w1_t=jnp.transpose(w1x1[:, :, :, 0], (0, 2, 1)),       # (L, C_in, C_out)
        b1=b1x1[:, None, :],                                   # (L, 1, C)
        w_out_t=jnp.transpose(w_out[:, :, 0]),                 # (C, F)
        b_out=b_out[None, :],                                  # (1, F)
    )
    return torch_params, kernel_params


# ---------------- pure-JAX reference (PyTorch Conv1d semantics) ---------------

def torch_conv1d(x, w, b, dilation=1, padding=0):
    # x: (N, C_in, T), w: (C_out, C_in, K), b: (C_out,)
    y = jax.lax.conv_general_dilated(
        x, w, window_strides=(1,), padding=[(padding, padding)],
        rhs_dilation=(dilation,), dimension_numbers=("NCH", "OIH", "NCH"))
    return y + b[None, :, None]


def refinement_reference(x, tp, num_layers):
    f = torch_conv1d(x, tp["w_in"], tp["b_in"])
    for l in range(num_layers):
        d = 2 ** l
        h = jax.nn.relu(torch_conv1d(f, tp["wdil"][l], tp["bdil"][l],
                                     dilation=d, padding=d))
        h = torch_conv1d(h, tp["w1x1"][l], tp["b1x1"][l])
        f = f + h                                          # dropout = identity (eval)
    return torch_conv1d(f, tp["w_out"], tp["b_out"])


if __name__ == "__main__":
    # small, module-consistent shapes (production: T in the thousands,
    # interm_dim=64, num_layers=10 — benchmark there, not here)
    N, final_dim, T = 2, 8, 64
    interm_dim, num_layers = 32, 4

    key = jax.random.PRNGKey(0)
    kx, kp = jax.random.split(key)
    x = jax.random.normal(kx, (N, final_dim, T), jnp.float32)   # PyTorch NCT

    torch_params, kernel_params = make_params(kp, final_dim, interm_dim, num_layers)

    ref = jax.block_until_ready(refinement_reference(x, torch_params, num_layers))

    # Default fast path: bf16 MXU operands, f32 accumulation & residual.
    out_bf16 = jax.block_until_ready(refinement_forward(x, kernel_params))
    assert out_bf16.shape == (N, final_dim, T), out_bf16.shape
    np.testing.assert_allclose(np.asarray(out_bf16), np.asarray(ref),
                               rtol=5e-2, atol=5e-2)

    # Exact path: f32 MXU operands (multi-pass MXU emulation, tight tolerance).
    out_f32 = jax.block_until_ready(
        refinement_forward(x, kernel_params, compute_dtype=jnp.float32))
    np.testing.assert_allclose(np.asarray(out_f32), np.asarray(ref),
                               rtol=1e-4, atol=1e-4)

    print("KERNEL_OK")
</pallas_src>

<mosaic_0001>
module attributes {stable_mosaic.version = 11 : i64} {
  func.func @refinement_kernel(%arg0: i32, %arg1: memref<1x64x8xf32, #tpu.memory_space<vmem>>, %arg2: memref<8x32xbf16, #tpu.memory_space<vmem>>, %arg3: memref<1x32xf32, #tpu.memory_space<vmem>>, %arg4: memref<4x3x32x32xbf16, #tpu.memory_space<vmem>>, %arg5: memref<4x1x32xf32, #tpu.memory_space<vmem>>, %arg6: memref<4x32x32xbf16, #tpu.memory_space<vmem>>, %arg7: memref<4x1x32xf32, #tpu.memory_space<vmem>>, %arg8: memref<32x8xbf16, #tpu.memory_space<vmem>>, %arg9: memref<1x8xf32, #tpu.memory_space<vmem>>, %arg10: memref<1x64x8xf32, #tpu.memory_space<vmem>>, %arg11: memref<96x32xbf16, #tpu.memory_space<vmem>>) attributes {dimension_semantics = [#tpu.dimension_semantics<parallel>], iteration_bounds = array<i64: 2>, scalar_prefetch = 0 : i64, scratch_operands = 1 : i64, tpu.core_type = #tpu.core_type<tc>, window_params = [{transform_indices = @transform_0, window_bounds = array<i64: 1, 64, 8>}, {pipeline_mode = #tpu.pipeline_mode<synchronous>, transform_indices = @transform_1, window_bounds = array<i64: 8, 32>}, {pipeline_mode = #tpu.pipeline_mode<synchronous>, transform_indices = @transform_2, window_bounds = array<i64: 1, 32>}, {pipeline_mode = #tpu.pipeline_mode<synchronous>, transform_indices = @transform_3, window_bounds = array<i64: 4, 3, 32, 32>}, {pipeline_mode = #tpu.pipeline_mode<synchronous>, transform_indices = @transform_4, window_bounds = array<i64: 4, 1, 32>}, {pipeline_mode = #tpu.pipeline_mode<synchronous>, transform_indices = @transform_5, window_bounds = array<i64: 4, 32, 32>}, {pipeline_mode = #tpu.pipeline_mode<synchronous>, transform_indices = @transform_6, window_bounds = array<i64: 4, 1, 32>}, {pipeline_mode = #tpu.pipeline_mode<synchronous>, transform_indices = @transform_7, window_bounds = array<i64: 32, 8>}, {pipeline_mode = #tpu.pipeline_mode<synchronous>, transform_indices = @transform_8, window_bounds = array<i64: 1, 8>}, {transform_indices = @transform_9, window_bounds = array<i64: 1, 64, 8>}]} {
    %cst = arith.constant 0.000000e+00 : bf16
    %0 = vector.broadcast %cst : bf16 to vector<16x32xbf16>
    %c0 = arith.constant 0 : index
    %c0_0 = arith.constant 0 : index
    %1 = vector.load %arg11[%c0, %c0_0] : memref<96x32xbf16, #tpu.memory_space<vmem>>, vector<16x32xbf16>
    tpu.vector_store %arg11[%c0, %c0_0], %0 {strides = array<i32>} : memref<96x32xbf16, #tpu.memory_space<vmem>>, vector<16x32xbf16>,
    %cst_1 = arith.constant 0.000000e+00 : bf16
    %2 = vector.broadcast %cst_1 : bf16 to vector<16x32xbf16>
    %c80 = arith.constant 80 : index
    %c0_2 = arith.constant 0 : index
    %3 = vector.load %arg11[%c80, %c0_2] : memref<96x32xbf16, #tpu.memory_space<vmem>>, vector<16x32xbf16>
    tpu.vector_store %arg11[%c80, %c0_2], %2 {strides = array<i32>} : memref<96x32xbf16, #tpu.memory_space<vmem>>, vector<16x32xbf16>,
    %c0_3 = arith.constant 0 : index
    %c0_4 = arith.constant 0 : index
    %c0_5 = arith.constant 0 : index
    %4 = vector.load %arg1[%c0_3, %c0_4, %c0_5] : memref<1x64x8xf32, #tpu.memory_space<vmem>>, vector<1x64x8xf32>
    %5 = vector.shape_cast %4 : vector<1x64x8xf32> to vector<64x8xf32>
    %6 = arith.truncf %5 : vector<64x8xf32> to vector<64x8xbf16>
    %c0_6 = arith.constant 0 : index
    %c0_7 = arith.constant 0 : index
    %7 = vector.load %arg2[%c0_6, %c0_7] : memref<8x32xbf16, #tpu.memory_space<vmem>>, vector<8x32xbf16>
    %cst_8 = arith.constant dense<0.000000e+00> : vector<64x32xf32>
    %8 = tpu.matmul %6, %7, %cst_8 {dimension_numbers = #tpu.dot_dimension_numbers<[1], [0], [0], [1], [0, 0, 1, 1], [], []>} : vector<64x8xbf16>, vector<8x32xbf16>, vector<64x32xf32> -> vector<64x32xf32>
    %c0_9 = arith.constant 0 : index
    %c0_10 = arith.constant 0 : index
    %9 = vector.load %arg3[%c0_9, %c0_10] : memref<1x32xf32, #tpu.memory_space<vmem>>, vector<1x32xf32>
    %10 = vector.broadcast %9 : vector<1x32xf32> to vector<64x32xf32>
    %11 = arith.addf %8, %10 : vector<64x32xf32>
    %12 = arith.truncf %11 : vector<64x32xf32> to vector<64x32xbf16>
    %c16 = arith.constant 16 : index
    %c0_11 = arith.constant 0 : index
    %13 = vector.load %arg11[%c16, %c0_11] : memref<96x32xbf16, #tpu.memory_space<vmem>>, vector<64x32xbf16>
    tpu.vector_store %arg11[%c16, %c0_11], %12 {strides = array<i32>} : memref<96x32xbf16, #tpu.memory_space<vmem>>, vector<64x32xbf16>,
    %c15 = arith.constant 15 : index
    %c0_12 = arith.constant 0 : index
    %14 = vector.load %arg11[%c15, %c0_12] : memref<96x32xbf16, #tpu.memory_space<vmem>>, vector<64x32xbf16>
    %c17 = arith.constant 17 : index
    %c0_13 = arith.constant 0 : index
    %15 = vector.load %arg11[%c17, %c0_13] : memref<96x32xbf16, #tpu.memory_space<vmem>>, vector<64x32xbf16>
    %c0_14 = arith.constant 0 : index
    %c0_15 = arith.constant 0 : index
    %c0_16 = arith.constant 0 : index
    %c0_17 = arith.constant 0 : index
    %16 = vector.load %arg4[%c0_14, %c0_15, %c0_16, %c0_17] : memref<4x3x32x32xbf16, #tpu.memory_space<vmem>>, vector<1x1x32x32xbf16>
    %17 = vector.shape_cast %16 : vector<1x1x32x32xbf16> to vector<32x32xbf16>
    %cst_18 = arith.constant dense<0.000000e+00> : vector<64x32xf32>
    %18 = tpu.matmul %14, %17, %cst_18 {dimension_numbers = #tpu.dot_dimension_numbers<[1], [0], [0], [1], [0, 0, 1, 1], [], []>} : vector<64x32xbf16>, vector<32x32xbf16>, vector<64x32xf32> -> vector<64x32xf32>
    %c0_19 = arith.constant 0 : index
    %c1 = arith.constant 1 : index
    %c0_20 = arith.constant 0 : index
    %c0_21 = arith.constant 0 : index
    %19 = vector.load %arg4[%c0_19, %c1, %c0_20, %c0_21] : memref<4x3x32x32xbf16, #tpu.memory_space<vmem>>, vector<1x1x32x32xbf16>
    %20 = vector.shape_cast %19 : vector<1x1x32x32xbf16> to vector<32x32xbf16>
    %cst_22 = arith.constant dense<0.000000e+00> : vector<64x32xf32>
    %21 = tpu.matmul %12, %20, %cst_22 {dimension_numbers = #tpu.dot_dimension_numbers<[1], [0], [0], [1], [0, 0, 1, 1], [], []>} : vector<64x32xbf16>, vector<32x32xbf16>, vector<64x32xf32> -> vector<64x32xf32>
    %22 = arith.addf %18, %21 : vector<64x32xf32>
    %c0_23 = arith.constant 0 : index
    %c2 = arith.constant 2 : index
    %c0_24 = arith.constant 0 : index
    %c0_25 = arith.constant 0 : index
    %23 = vector.load %arg4[%c0_23, %c2, %c0_24, %c0_25] : memref<4x3x32x32xbf16, #tpu.memory_space<vmem>>, vector<1x1x32x32xbf16>
    %24 = vector.shape_cast %23 : vector<1x1x32x32xbf16> to vector<32x32xbf16>
    %cst_26 = arith.constant dense<0.000000e+00> : vector<64x32xf32>
    %25 = tpu.matmul %15, %24, %cst_26 {dimension_numbers = #tpu.dot_dimension_numbers<[1], [0], [0], [1], [0, 0, 1, 1], [], []>} : vector<64x32xbf16>, vector<32x32xbf16>, vector<64x32xf32> -> vector<64x32xf32>
    %26 = arith.addf %22, %25 : vector<64x32xf32>
    %c0_27 = arith.constant 0 : index
    %c0_28 = arith.constant 0 : index
    %c0_29 = arith.constant 0 : index
    %27 = vector.load %arg5[%c0_27, %c0_28, %c0_29] : memref<4x1x32xf32, #tpu.memory_space<vmem>>, vector<1x1x32xf32>
    %28 = vector.shape_cast %27 : vector<1x1x32xf32> to vector<1x32xf32>
    %29 = vector.broadcast %28 : vector<1x32xf32> to vector<64x32xf32>
    %30 = arith.addf %26, %29 : vector<64x32xf32>
    %cst_30 = arith.constant 0.000000e+00 : f32
    %31 = vector.broadcast %cst_30 : f32 to vector<64x32xf32>
    %32 = arith.maximumf %30, %31 : vector<64x32xf32>
    %33 = arith.truncf %32 : vector<64x32xf32> to vector<64x32xbf16>
    %c0_31 = arith.constant 0 : index
    %c0_32 = arith.constant 0 : index
    %c0_33 = arith.constant 0 : index
    %34 = vector.load %arg6[%c0_31, %c0_32, %c0_33] : memref<4x32x32xbf16, #tpu.memory_space<vmem>>, vector<1x32x32xbf16>
    %35 = vector.shape_cast %34 : vector<1x32x32xbf16> to vector<32x32xbf16>
    %cst_34 = arith.constant dense<0.000000e+00> : vector<64x32xf32>
    %36 = tpu.matmul %33, %35, %cst_34 {dimension_numbers = #tpu.dot_dimension_numbers<[1], [0], [0], [1], [0, 0, 1, 1], [], []>} : vector<64x32xbf16>, vector<32x32xbf16>, vector<64x32xf32> -> vector<64x32xf32>
    %c0_35 = arith.constant 0 : index
    %c0_36 = arith.constant 0 : index
    %c0_37 = arith.constant 0 : index
    %37 = vector.load %arg7[%c0_35, %c0_36, %c0_37] : memref<4x1x32xf32, #tpu.memory_space<vmem>>, vector<1x1x32xf32>
    %38 = vector.shape_cast %37 : vector<1x1x32xf32> to vector<1x32xf32>
    %39 = vector.broadcast %38 : vector<1x32xf32> to vector<64x32xf32>
    %40 = arith.addf %36, %39 : vector<64x32xf32>
    %41 = arith.addf %11, %40 : vector<64x32xf32>
    %42 = arith.truncf %41 : vector<64x32xf32> to vector<64x32xbf16>
    %c16_38 = arith.constant 16 : index
    %c0_39 = arith.constant 0 : index
    %43 = vector.load %arg11[%c16_38, %c0_39] : memref<96x32xbf16, #tpu.memory_space<vmem>>, vector<64x32xbf16>
    tpu.vector_store %arg11[%c16_38, %c0_39], %42 {strides = array<i32>} : memref<96x32xbf16, #tpu.memory_space<vmem>>, vector<64x32xbf16>,
    %c14 = arith.constant 14 : index
    %c0_40 = arith.constant 0 : index
    %44 = vector.load %arg11[%c14, %c0_40] : memref<96x32xbf16, #tpu.memory_space<vmem>>, vector<64x32xbf16>
    %c18 = arith.constant 18 : index
    %c0_41 = arith.constant 0 : index
    %45 = vector.load %arg11[%c18, %c0_41] : memref<96x32xbf16, #tpu.memory_space<vmem>>, vector<64x32xbf16>
    %c1_42 = arith.constant 1 : index
    %c0_43 = arith.constant 0 : index
    %c0_44 = arith.constant 0 : index
    %c0_45 = arith.constant 0 : index
    %46 = vector.load %arg4[%c1_42, %c0_43, %c0_44, %c0_45] : memref<4x3x32x32xbf16, #tpu.memory_space<vmem>>, vector<1x1x32x32xbf16>
    %47 = vector.shape_cast %46 : vector<1x1x32x32xbf16> to vector<32x32xbf16>
    %cst_46 = arith.constant dense<0.000000e+00> : vector<64x32xf32>
    %48 = tpu.matmul %44, %47, %cst_46 {dimension_numbers = #tpu.dot_dimension_numbers<[1], [0], [0], [1], [0, 0, 1, 1], [], []>} : vector<64x32xbf16>, vector<32x32xbf16>, vector<64x32xf32> -> vector<64x32xf32>
    %c1_47 = arith.constant 1 : index
    %c1_48 = arith.constant 1 : index
    %c0_49 = arith.constant 0 : index
    %c0_50 = arith.constant 0 : index
    %49 = vector.load %arg4[%c1_47, %c1_48, %c0_49, %c0_50] : memref<4x3x32x32xbf16, #tpu.memory_space<vmem>>, vector<1x1x32x32xbf16>
    %50 = vector.shape_cast %49 : vector<1x1x32x32xbf16> to vector<32x32xbf16>
    %cst_51 = arith.constant dense<0.000000e+00> : vector<64x32xf32>
    %51 = tpu.matmul %42, %50, %cst_51 {dimension_numbers = #tpu.dot_dimension_numbers<[1], [0], [0], [1], [0, 0, 1, 1], [], []>} : vector<64x32xbf16>, vector<32x32xbf16>, vector<64x32xf32> -> vector<64x32xf32>
    %52 = arith.addf %48, %51 : vector<64x32xf32>
    %c1_52 = arith.constant 1 : index
    %c2_53 = arith.constant 2 : index
    %c0_54 = arith.constant 0 : index
    %c0_55 = arith.constant 0 : index
    %53 = vector.load %arg4[%c1_52, %c2_53, %c0_54, %c0_55] : memref<4x3x32x32xbf16, #tpu.memory_space<vmem>>, vector<1x1x32x32xbf16>
    %54 = vector.shape_cast %53 : vector<1x1x32x32xbf16> to vector<32x32xbf16>
    %cst_56 = arith.constant dense<0.000000e+00> : vector<64x32xf32>
    %55 = tpu.matmul %45, %54, %cst_56 {dimension_numbers = #tpu.dot_dimension_numbers<[1], [0], [0], [1], [0, 0, 1, 1], [], []>} : vector<64x32xbf16>, vector<32x32xbf16>, vector<64x32xf32> -> vector<64x32xf32>
    %56 = arith.addf %52, %55 : vector<64x32xf32>
    %c1_57 = arith.constant 1 : index
    %c0_58 = arith.constant 0 : index
    %c0_59 = arith.constant 0 : index
    %57 = vector.load %arg5[%c1_57, %c0_58, %c0_59] : memref<4x1x32xf32, #tpu.memory_space<vmem>>, vector<1x1x32xf32>
    %58 = vector.shape_cast %57 : vector<1x1x32xf32> to vector<1x32xf32>
    %59 = vector.broadcast %58 : vector<1x32xf32> to vector<64x32xf32>
    %60 = arith.addf %56, %59 : vector<64x32xf32>
    %cst_60 = arith.constant 0.000000e+00 : f32
    %61 = vector.broadcast %cst_60 : f32 to vector<64x32xf32>
    %62 = arith.maximumf %60, %61 : vector<64x32xf32>
    %63 = arith.truncf %62 : vector<64x32xf32> to vector<64x32xbf16>
    %c1_61 = arith.constant 1 : index
    %c0_62 = arith.constant 0 : index
    %c0_63 = arith.constant 0 : index
    %64 = vector.load %arg6[%c1_61, %c0_62, %c0_63] : memref<4x32x32xbf16, #tpu.memory_space<vmem>>, vector<1x32x32xbf16>
    %65 = vector.shape_cast %64 : vector<1x32x32xbf16> to vector<32x32xbf16>
    %cst_64 = arith.constant dense<0.000000e+00> : vector<64x32xf32>
    %66 = tpu.matmul %63, %65, %cst_64 {dimension_numbers = #tpu.dot_dimension_numbers<[1], [0], [0], [1], [0, 0, 1, 1], [], []>} : vector<64x32xbf16>, vector<32x32xbf16>, vector<64x32xf32> -> vector<64x32xf32>
    %c1_65 = arith.constant 1 : index
    %c0_66 = arith.constant 0 : index
    %c0_67 = arith.constant 0 : index
    %67 = vector.load %arg7[%c1_65, %c0_66, %c0_67] : memref<4x1x32xf32, #tpu.memory_space<vmem>>, vector<1x1x32xf32>
    %68 = vector.shape_cast %67 : vector<1x1x32xf32> to vector<1x32xf32>
    %69 = vector.broadcast %68 : vector<1x32xf32> to vector<64x32xf32>
    %70 = arith.addf %66, %69 : vector<64x32xf32>
    %71 = arith.addf %41, %70 : vector<64x32xf32>
    %72 = arith.truncf %71 : vector<64x32xf32> to vector<64x32xbf16>
    %c16_68 = arith.constant 16 : index
    %c0_69 = arith.constant 0 : index
    %73 = vector.load %arg11[%c16_68, %c0_69] : memref<96x32xbf16, #tpu.memory_space<vmem>>, vector<64x32xbf16>
    tpu.vector_store %arg11[%c16_68, %c0_69], %72 {strides = array<i32>} : memref<96x32xbf16, #tpu.memory_space<vmem>>, vector<64x32xbf16>,
    %c12 = arith.constant 12 : index
    %c0_70 = arith.constant 0 : index
    %74 = vector.load %arg11[%c12, %c0_70] : memref<96x32xbf16, #tpu.memory_space<vmem>>, vector<64x32xbf16>
    %c20 = arith.constant 20 : index
    %c0_71 = arith.constant 0 : index
    %75 = vector.load %arg11[%c20, %c0_71] : memref<96x32xbf16, #tpu.memory_space<vmem>>, vector<64x32xbf16>
    %c2_72 = arith.constant 2 : index
    %c0_73 = arith.constant 0 : index
    %c0_74 = arith.constant 0 : index
    %c0_75 = arith.constant 0 : index
    %76 = vector.load %arg4[%c2_72, %c0_73, %c0_74, %c0_75] : memref<4x3x32x32xbf16, #tpu.memory_space<vmem>>, vector<1x1x32x32xbf16>
    %77 = vector.shape_cast %76 : vector<1x1x32x32xbf16> to vector<32x32xbf16>
    %cst_76 = arith.constant dense<0.000000e+00> : vector<64x32xf32>
    %78 = tpu.matmul %74, %77, %cst_76 {dimension_numbers = #tpu.dot_dimension_numbers<[1], [0], [0], [1], [0, 0, 1, 1], [], []>} : vector<64x32xbf16>, vector<32x32xbf16>, vector<64x32xf32> -> vector<64x32xf32>
    %c2_77 = arith.constant 2 : index
    %c1_78 = arith.constant 1 : index
    %c0_79 = arith.constant 0 : index
    %c0_80 = arith.constant 0 : index
    %79 = vector.load %arg4[%c2_77, %c1_78, %c0_79, %c0_80] : memref<4x3x32x32xbf16, #tpu.memory_space<vmem>>, vector<1x1x32x32xbf16>
    %80 = vector.shape_cast %79 : vector<1x1x32x32xbf16> to vector<32x32xbf16>
    %cst_81 = arith.constant dense<0.000000e+00> : vector<64x32xf32>
    %81 = tpu.matmul %72, %80, %cst_81 {dimension_numbers = #tpu.dot_dimension_numbers<[1], [0], [0], [1], [0, 0, 1, 1], [], []>} : vector<64x32xbf16>, vector<32x32xbf16>, vector<64x32xf32> -> vector<64x32xf32>
    %82 = arith.addf %78, %81 : vector<64x32xf32>
    %c2_82 = arith.constant 2 : index
    %c2_83 = arith.constant 2 : index
    %c0_84 = arith.constant 0 : index
    %c0_85 = arith.constant 0 : index
    %83 = vector.load %arg4[%c2_82, %c2_83, %c0_84, %c0_85] : memref<4x3x32x32xbf16, #tpu.memory_space<vmem>>, vector<1x1x32x32xbf16>
    %84 = vector.shape_cast %83 : vector<1x1x32x32xbf16> to vector<32x32xbf16>
    %cst_86 = arith.constant dense<0.000000e+00> : vector<64x32xf32>
    %85 = tpu.matmul %75, %84, %cst_86 {dimension_numbers = #tpu.dot_dimension_numbers<[1], [0], [0], [1], [0, 0, 1, 1], [], []>} : vector<64x32xbf16>, vector<32x32xbf16>, vector<64x32xf32> -> vector<64x32xf32>
    %86 = arith.addf %82, %85 : vector<64x32xf32>
    %c2_87 = arith.constant 2 : index
    %c0_88 = arith.constant 0 : index
    %c0_89 = arith.constant 0 : index
    %87 = vector.load %arg5[%c2_87, %c0_88, %c0_89] : memref<4x1x32xf32, #tpu.memory_space<vmem>>, vector<1x1x32xf32>
    %88 = vector.shape_cast %87 : vector<1x1x32xf32> to vector<1x32xf32>
    %89 = vector.broadcast %88 : vector<1x32xf32> to vector<64x32xf32>
    %90 = arith.addf %86, %89 : vector<64x32xf32>
    %cst_90 = arith.constant 0.000000e+00 : f32
    %91 = vector.broadcast %cst_90 : f32 to vector<64x32xf32>
    %92 = arith.maximumf %90, %91 : vector<64x32xf32>
    %93 = arith.truncf %92 : vector<64x32xf32> to vector<64x32xbf16>
    %c2_91 = arith.constant 2 : index
    %c0_92 = arith.constant 0 : index
    %c0_93 = arith.constant 0 : index
    %94 = vector.load %arg6[%c2_91, %c0_92, %c0_93] : memref<4x32x32xbf16, #tpu.memory_space<vmem>>, vector<1x32x32xbf16>
    %95 = vector.shape_cast %94 : vector<1x32x32xbf16> to vector<32x32xbf16>
    %cst_94 = arith.constant dense<0.000000e+00> : vector<64x32xf32>
    %96 = tpu.matmul %93, %95, %cst_94 {dimension_numbers = #tpu.dot_dimension_numbers<[1], [0], [0], [1], [0, 0, 1, 1], [], []>} : vector<64x32xbf16>, vector<32x32xbf16>, vector<64x32xf32> -> vector<64x32xf32>
    %c2_95 = arith.constant 2 : index
    %c0_96 = arith.constant 0 : index
    %c0_97 = arith.constant 0 : index
    %97 = vector.load %arg7[%c2_95, %c0_96, %c0_97] : memref<4x1x32xf32, #tpu.memory_space<vmem>>, vector<1x1x32xf32>
    %98 = vector.shape_cast %97 : vector<1x1x32xf32> to vector<1x32xf32>
    %99 = vector.broadcast %98 : vector<1x32xf32> to vector<64x32xf32>
    %100 = arith.addf %96, %99 : vector<64x32xf32>
    %101 = arith.addf %71, %100 : vector<64x32xf32>
    %102 = arith.truncf %101 : vector<64x32xf32> to vector<64x32xbf16>
    %c16_98 = arith.constant 16 : index
    %c0_99 = arith.constant 0 : index
    %103 = vector.load %arg11[%c16_98, %c0_99] : memref<96x32xbf16, #tpu.memory_space<vmem>>, vector<64x32xbf16>
    tpu.vector_store %arg11[%c16_98, %c0_99], %102 {strides = array<i32>} : memref<96x32xbf16, #tpu.memory_space<vmem>>, vector<64x32xbf16>,
    %c8 = arith.constant 8 : index
    %c0_100 = arith.constant 0 : index
    %104 = vector.load %arg11[%c8, %c0_100] : memref<96x32xbf16, #tpu.memory_space<vmem>>, vector<64x32xbf16>
    %c24 = arith.constant 24 : index
    %c0_101 = arith.constant 0 : index
    %105 = vector.load %arg11[%c24, %c0_101] : memref<96x32xbf16, #tpu.memory_space<vmem>>, vector<64x32xbf16>
    %c3 = arith.constant 3 : index
    %c0_102 = arith.constant 0 : index
    %c0_103 = arith.constant 0 : index
    %c0_104 = arith.constant 0 : index
    %106 = vector.load %arg4[%c3, %c0_102, %c0_103, %c0_104] : memref<4x3x32x32xbf16, #tpu.memory_space<vmem>>, vector<1x1x32x32xbf16>
    %107 = vector.shape_cast %106 : vector<1x1x32x32xbf16> to vector<32x32xbf16>
    %cst_105 = arith.constant dense<0.000000e+00> : vector<64x32xf32>
    %108 = tpu.matmul %104, %107, %cst_105 {dimension_numbers = #tpu.dot_dimension_numbers<[1], [0], [0], [1], [0, 0, 1, 1], [], []>} : vector<64x32xbf16>, vector<32x32xbf16>, vector<64x32xf32> -> vector<64x32xf32>
    %c3_106 = arith.constant 3 : index
    %c1_107 = arith.constant 1 : index
    %c0_108 = arith.constant 0 : index
    %c0_109 = arith.constant 0 : index
    %109 = vector.load %arg4[%c3_106, %c1_107, %c0_108, %c0_109] : memref<4x3x32x32xbf16, #tpu.memory_space<vmem>>, vector<1x1x32x32xbf16>
    %110 = vector.shape_cast %109 : vector<1x1x32x32xbf16> to vector<32x32xbf16>
    %cst_110 = arith.constant dense<0.000000e+00> : vector<64x32xf32>
    %111 = tpu.matmul %102, %110, %cst_110 {dimension_numbers = #tpu.dot_dimension_numbers<[1], [0], [0], [1], [0, 0, 1, 1], [], []>} : vector<64x32xbf16>, vector<32x32xbf16>, vector<64x32xf32> -> vector<64x32xf32>
    %112 = arith.addf %108, %111 : vector<64x32xf32>
    %c3_111 = arith.constant 3 : index
    %c2_112 = arith.constant 2 : index
    %c0_113 = arith.constant 0 : index
    %c0_114 = arith.constant 0 : index
    %113 = vector.load %arg4[%c3_111, %c2_112, %c0_113, %c0_114] : memref<4x3x32x32xbf16, #tpu.memory_space<vmem>>, vector<1x1x32x32xbf16>
    %114 = vector.shape_cast %113 : vector<1x1x32x32xbf16> to vector<32x32xbf16>
    %cst_115 = arith.constant dense<0.000000e+00> : vector<64x32xf32>
    %115 = tpu.matmul %105, %114, %cst_115 {dimension_numbers = #tpu.dot_dimension_numbers<[1], [0], [0], [1], [0, 0, 1, 1], [], []>} : vector<64x32xbf16>, vector<32x32xbf16>, vector<64x32xf32> -> vector<64x32xf32>
    %116 = arith.addf %112, %115 : vector<64x32xf32>
    %c3_116 = arith.constant 3 : index
    %c0_117 = arith.constant 0 : index
    %c0_118 = arith.constant 0 : index
    %117 = vector.load %arg5[%c3_116, %c0_117, %c0_118] : memref<4x1x32xf32, #tpu.memory_space<vmem>>, vector<1x1x32xf32>
    %118 = vector.shape_cast %117 : vector<1x1x32xf32> to vector<1x32xf32>
    %119 = vector.broadcast %118 : vector<1x32xf32> to vector<64x32xf32>
    %120 = arith.addf %116, %119 : vector<64x32xf32>
    %cst_119 = arith.constant 0.000000e+00 : f32
    %121 = vector.broadcast %cst_119 : f32 to vector<64x32xf32>
    %122 = arith.maximumf %120, %121 : vector<64x32xf32>
    %123 = arith.truncf %122 : vector<64x32xf32> to vector<64x32xbf16>
    %c3_120 = arith.constant 3 : index
    %c0_121 = arith.constant 0 : index
    %c0_122 = arith.constant 0 : index
    %124 = vector.load %arg6[%c3_120, %c0_121, %c0_122] : memref<4x32x32xbf16, #tpu.memory_space<vmem>>, vector<1x32x32xbf16>
    %125 = vector.shape_cast %124 : vector<1x32x32xbf16> to vector<32x32xbf16>
    %cst_123 = arith.constant dense<0.000000e+00> : vector<64x32xf32>
    %126 = tpu.matmul %123, %125, %cst_123 {dimension_numbers = #tpu.dot_dimension_numbers<[1], [0], [0], [1], [0, 0, 1, 1], [], []>} : vector<64x32xbf16>, vector<32x32xbf16>, vector<64x32xf32> -> vector<64x32xf32>
    %c3_124 = arith.constant 3 : index
    %c0_125 = arith.constant 0 : index
    %c0_126 = arith.constant 0 : index
    %127 = vector.load %arg7[%c3_124, %c0_125, %c0_126] : memref<4x1x32xf32, #tpu.memory_space<vmem>>, vector<1x1x32xf32>
    %128 = vector.shape_cast %127 : vector<1x1x32xf32> to vector<1x32xf32>
    %129 = vector.broadcast %128 : vector<1x32xf32> to vector<64x32xf32>
    %130 = arith.addf %126, %129 : vector<64x32xf32>
    %131 = arith.addf %101, %130 : vector<64x32xf32>
    %132 = arith.truncf %131 : vector<64x32xf32> to vector<64x32xbf16>
    %c0_127 = arith.constant 0 : index
    %c0_128 = arith.constant 0 : index
    %133 = vector.load %arg8[%c0_127, %c0_128] : memref<32x8xbf16, #tpu.memory_space<vmem>>, vector<32x8xbf16>
    %cst_129 = arith.constant dense<0.000000e+00> : vector<64x8xf32>
    %134 = tpu.matmul %132, %133, %cst_129 {dimension_numbers = #tpu.dot_dimension_numbers<[1], [0], [0], [1], [0, 0, 1, 1], [], []>} : vector<64x32xbf16>, vector<32x8xbf16>, vector<64x8xf32> -> vector<64x8xf32>
    %c0_130 = arith.constant 0 : index
    %c0_131 = arith.constant 0 : index
    %135 = vector.load %arg9[%c0_130, %c0_131] : memref<1x8xf32, #tpu.memory_space<vmem>>, vector<1x8xf32>
    %136 = vector.broadcast %135 : vector<1x8xf32> to vector<64x8xf32>
    %137 = arith.addf %134, %136 : vector<64x8xf32>
    %c0_132 = arith.constant 0 : index
    %c0_133 = arith.constant 0 : index
    %c0_134 = arith.constant 0 : index
    %138 = vector.load %arg10[%c0_132, %c0_133, %c0_134] : memref<1x64x8xf32, #tpu.memory_space<vmem>>, vector<1x64x8xf32>
    %139 = vector.shape_cast %138 : vector<1x64x8xf32> to vector<64x8xf32>
    %140 = vector.shape_cast %137 : vector<64x8xf32> to vector<1x64x8xf32>
    tpu.vector_store %arg10[%c0_132, %c0_133, %c0_134], %140 {strides = array<i32>} : memref<1x64x8xf32, #tpu.memory_space<vmem>>, vector<1x64x8xf32>,
    return
  }
  func.func @transform_0(%arg0: i32) -> (i32, i32, i32) {
    %c0_i32 = arith.constant 0 : i32
    %c0_i32_0 = arith.constant 0 : i32
    %c0_i32_1 = arith.constant 0 : i32
    return %arg0, %c0_i32, %c0_i32_0 : i32, i32, i32
  }
  func.func @transform_1(%arg0: i32) -> (i32, i32) {
    %c0_i32 = arith.constant 0 : i32
    %c0_i32_0 = arith.constant 0 : i32
    %c0_i32_1 = arith.constant 0 : i32
    return %c0_i32, %c0_i32_0 : i32, i32
  }
  func.func @transform_2(%arg0: i32) -> (i32, i32) {
    %c0_i32 = arith.constant 0 : i32
    %c0_i32_0 = arith.constant 0 : i32
    %c0_i32_1 = arith.constant 0 : i32
    return %c0_i32, %c0_i32_0 : i32, i32
  }
  func.func @transform_3(%arg0: i32) -> (i32, i32, i32, i32) {
    %c0_i32 = arith.constant 0 : i32
    %c0_i32_0 = arith.constant 0 : i32
    %c0_i32_1 = arith.constant 0 : i32
    %c0_i32_2 = arith.constant 0 : i32
    %c0_i32_3 = arith.constant 0 : i32
    return %c0_i32, %c0_i32_0, %c0_i32_1, %c0_i32_2 : i32, i32, i32, i32
  }
  func.func @transform_4(%arg0: i32) -> (i32, i32, i32) {
    %c0_i32 = arith.constant 0 : i32
    %c0_i32_0 = arith.constant 0 : i32
    %c0_i32_1 = arith.constant 0 : i32
    %c0_i32_2 = arith.constant 0 : i32
    return %c0_i32, %c0_i32_0, %c0_i32_1 : i32, i32, i32
  }
  func.func @transform_5(%arg0: i32) -> (i32, i32, i32) {
    %c0_i32 = arith.constant 0 : i32
    %c0_i32_0 = arith.constant 0 : i32
    %c0_i32_1 = arith.constant 0 : i32
    %c0_i32_2 = arith.constant 0 : i32
    return %c0_i32, %c0_i32_0, %c0_i32_1 : i32, i32, i32
  }
  func.func @transform_6(%arg0: i32) -> (i32, i32, i32) {
    %c0_i32 = arith.constant 0 : i32
    %c0_i32_0 = arith.constant 0 : i32
    %c0_i32_1 = arith.constant 0 : i32
    %c0_i32_2 = arith.constant 0 : i32
    return %c0_i32, %c0_i32_0, %c0_i32_1 : i32, i32, i32
  }
  func.func @transform_7(%arg0: i32) -> (i32, i32) {
    %c0_i32 = arith.constant 0 : i32
    %c0_i32_0 = arith.constant 0 : i32
    %c0_i32_1 = arith.constant 0 : i32
    return %c0_i32, %c0_i32_0 : i32, i32
  }
  func.func @transform_8(%arg0: i32) -> (i32, i32) {
    %c0_i32 = arith.constant 0 : i32
    %c0_i32_0 = arith.constant 0 : i32
    %c0_i32_1 = arith.constant 0 : i32
    return %c0_i32, %c0_i32_0 : i32, i32
  }
  func.func @transform_9(%arg0: i32) -> (i32, i32, i32) {
    %c0_i32 = arith.constant 0 : i32
    %c0_i32_0 = arith.constant 0 : i32
    %c0_i32_1 = arith.constant 0 : i32
    return %arg0, %c0_i32, %c0_i32_0 : i32, i32, i32
  }
}

</mosaic_0001>

<bundles_post_ra>
// kernel: tpu_custom_call.1
= control target key start
LH: loop header
LB: loop body
LE: loop exit
PB: predicated region body
PF: predicated region fallthrough
CT: control target
= control target key end

     0   :  { %14 = vsyncpa [#allocation4], 0  ;;  %s2636_s30 = smov 0   ;;  %s3054_s0 = inlined_call_operand.vmem [shape: f32[2,64,8], index: 0, kind: input, shape index: {}]   ;;  %s3055_s1 = inlined_call_operand.vmem [shape: bf16[8,32], index: 1, kind: input, shape index: {}]   ;;  %s3056_s2 = inlined_call_operand.vmem [shape: f32[1,32], index: 2, kind: input, shape index: {}]   ;;  %s3057_s3 = inlined_call_operand.hbm [shape: bf16[4,3,32,32], index: 3, kind: input, shape index: {}]   ;;  %s3058_s4 = inlined_call_operand.vmem [shape: f32[4,1,32], index: 4, kind: input, shape index: {}]   ;;  %s3059_s5 = inlined_call_operand.vmem [shape: bf16[4,32,32], index: 5, kind: input, shape index: {}]   ;;  %s3060_s6 = inlined_call_operand.vmem [shape: f32[4,1,32], index: 6, kind: input, shape index: {}]   ;;  %s3061_s7 = inlined_call_operand.vmem [shape: bf16[32,8], index: 7, kind: input, shape index: {}]   ;;  %s3062_s8 = inlined_call_operand.vmem [shape: f32[1,8], index: 8, kind: input, shape index: {}]   ;;  %s3063_s9 = inlined_call_operand.vmem [shape: f32[2,64,8], index: 9, kind: output, shape index: {}]  }
   0x1 LB: > { %s262_s12 = sshll.u32 %s3057_s3, 4  ;;  %s2091_s13 = sadd.s32 4294967295, %s2580_s30   ;;  %s2580_s30 = sphi %s2636_s30, %s20_s30   ;;  %s263_s12 = int_to_ptr.hbm [resolvable:$true] %s262_s12 }
   0x2   : > { %p2093_p0 = scmp.ge.s32.totalorder %s2580_s30, 1  ;;  %p245_p1 = scmp.lt.s32.totalorder %s2580_s30, 3 }
   0x3   : > { %p2516_p2 = scmp.eq.s32.totalorder %s2091_s13, 0  ;;  %s2582_s14 = smov [#allocation3]  }
   0x4   : > { %p246_p3 = pnand %p2093_p0, %p245_p1  ;;  %s264_s15 = sshll.u32 %s2582_s14, 4  ;;  %s265_s15 = int_to_ptr.vmem [resolvable:$true] %s264_s15 }
   0x5   : > { %s2583_s16 = smov 64   ;;  %s2584_s17 = smov 4  }
   0x6   : > { %p2512_p4 = pneg %p246_p3  ;;  %303 = sbr.rel (%p246_p3) target bundleno = 1638 (0x666), region = 56 }
   0x8   : > { %p2513_p5 = pnand %p2516_p2, %p2512_p4 }
   0xa   : > { %2515 = dma.hbm_to_vmem [thread:$0]  (!%p2513_p5), %s263_s12, 3072, %s265_s15, [#allocation4], %s2583_s16, %s2583_s16, %s2584_s17  }
   0xb   : > { %2575 = dma.done.wait (%p2516_p2), [#allocation4], 3072  }
   0xc   : > { %2577 = vsyncadd (%p2516_p2), [#allocation4], 4294964224  ;;  %p340_p6 = scmp.lt.s32.totalorder %s2091_s13, 1  ;;  %vm386_vm0 = vcmask 1043456   ;;  %v368_v0 = vld [vmem:[%s3055_s1] sm:$0xf] }
   0xd   : > { %v388_v3 = vsel %vm386_vm0, %v368_v0, 0  ;;  %vm373_vm1 = vcmask 64512   ;;  %v2363_v14 = vld [vmem:[#allocation3 + $0x18] sm:$0xff]  ;;  %vm351_vm2 = vcmask 257024   ;;  %v2362_v15 = vld [vmem:[#allocation3 + $0x10] sm:$0xff]  ;;  %v2585_v16 = vmov 0  }
   0xe   : > { %s3065_s13 = smov (!%p340_p6, %s2091_s13), 1  ;;  %397 = vmatpush.bf16.msra.mxu0 %v388_v3  ;;  %2490 = vmatpush.bf16.msra.mxu3 %v388_v3  ;;  %353 = vst.msk [vmem:[#allocation2 + $0x4] sm:$0xf] %vm351_vm2, %v2585_v16  ;;  %v2365_v17 = vld [vmem:[#allocation3 + $0x28] sm:$0xff]  ;;  %v2364_v18 = vld [vmem:[#allocation3 + $0x20] sm:$0xff]  ;;  %vm486_vm3 = vcmask 261120  }
   0xf   : > { %s2358_s18 = sshll.u32 %s3065_s13, 6  ;;  %505 = vmatpush.bf16.msra.mxu1 %v2363_v14  ;;  %2491 = vmatpush.bf16.msra.mxu2 %v2363_v14  ;;  %354 = vst.msk [vmem:[#allocation2 + $0x28] sm:$0xf] %vm351_vm2, %v2585_v16  ;;  %v2667_v19 = vld [vmem:[%s3056_s2] ss:$0 sm:$0xff]  ;;  %v2361_v30 = vld [vmem:[#allocation3 + $0x8] sm:$0xff] }
  0x10   : > { %s344_s21 = scalar_lea.vmem %s3054_s0, %s2358_s18  ;;  %v2360_v42 = vld [vmem:[#allocation3] sm:$0xff]  ;;  %vm661_vm4 = vsmask.f32 7424  ;;  %vm551_vm5 = vsmask.f32 4352  ;;  %vm1065_vm6 = vcmask 1046528   ;;  %s349_s10 = scalar_lea.vmem %s3063_s9, %s2358_s18 }
  0x11   : > { %v356_v1 = vld [vmem:[%s344_s21] sm:$0xff]  ;;  %v357_v2 = vld [vmem:[%s344_s21 + $0x8] sm:$0xff]  ;;  %v358_v5 = vld [vmem:[%s344_s21 + $0x10] sm:$0xff]  ;;  %vm986_vm7 = vcmask 1044480   ;;  %vm1366_vm8 = vcmask 1045504  }
  0x12   : > { %v364_v4 = vpack.c.bf16 %v357_v2, %v356_v1  ;;  %v359_v6 = vld [vmem:[%s344_s21 + $0x18] sm:$0xff]  ;;  %v360_v8 = vld [vmem:[%s344_s21 + $0x20] sm:$0xff]  ;;  %v361_v9 = vld [vmem:[%s344_s21 + $0x28] sm:$0xff]  ;;  %728 = vmatpush.bf16.msrb.mxu3 %v2365_v17 }
  0x13   : > { %v365_v7 = vpack.c.bf16 %v359_v6, %v358_v5  ;;  %v366_v10 = vpack.c.bf16 %v361_v9, %v360_v8  ;;  %v362_v11 = vld [vmem:[%s344_s21 + $0x30] sm:$0xff]  ;;  %v363_v12 = vld [vmem:[%s344_s21 + $0x38] sm:$0xff]  ;;  %506 = vmatpush.bf16.msra.mxu1 %v2362_v15  ;;  %2492 = vmatpush.bf16.msra.mxu2 %v2362_v15 }
  0x14   : > { %2102 = vmatmul.msk.bf16.vlgmr.msra.gmra.mxu0 %vm373_vm1, %v364_v4  ;;  %v367_v13 = vpack.c.bf16 %v363_v12, %v362_v11 }
  0x15   : > { %2103 = vmatmul.msk.bf16.vlgmr.msra.gmra.mxu3 %vm373_vm1, %v365_v7  ;;  %v2453_v8 = vld [vmem:[#allocation2 + $0x4] sm:$0x8] }
  0x16   : > { %729 = vmatpush.bf16.msrb.mxu3 %v2364_v18 }
  0x17   : > { %626 = vmatpush.bf16.msrb.mxu2 %v2361_v30 }
  0x1b   : > { %627 = vmatpush.bf16.msrb.mxu2 %v2360_v42 }
  0x25   : > { %2104 = vmatmul.msk.bf16.gmra.mxu3 %vm373_vm1, %v366_v10 }
  0x35   : > { %2105 = vmatmul.msk.bf16.gmra.mxu3 %vm373_vm1, %v367_v13 }
  0x91   : > { %v399_v20 = vpop.f32.mrf.mxu0 }
  0x92   : > { %v2670_v21 = vadd.f32 %v2667_v19, %v399_v20  ;;  %v444_v20 = vld [vmem:[#allocation2 + $0x28] sm:$0x1] }
  0x94   : > { %v419_v22 = vpack.c.bf16 %v2670_v21, %v2670_v21 }
  0x96   : > { %427 = vst.msk [vmem:[#allocation2 + $0x8] sm:$0xf] %vm351_vm2, %v419_v22  ;;  %v462_v28 = vunpack.c.l.b16 %v419_v22 }
  0x98   : > { %v404_v23 = vpop.f32.mrf.mxu3 }
  0x99   : > { %v2676_v24 = vadd.f32 %v2667_v19, %v404_v23  ;;  %v401_v25 = vpop.f32.mrf.mxu0 }
  0x9a   : > { %v2681_v27 = vadd.f32 %v2667_v19, %v401_v25 }
  0x9b   : > { %v421_v26 = vpack.c.bf16 %v2676_v24, %v2676_v24 }
  0x9c   : > { %v420_v29 = vpack.c.bf16 %v2681_v27, %v2681_v27 }
  0x9d   : > { %429 = vst.msk [vmem:[#allocation2 + $0x10] sm:$0xf] %vm351_vm2, %v421_v26  ;;  %v464_v48 = vunpack.c.l.b16 %v421_v26  ;;  %v2494_v9 = vld [vmem:[#allocation2 + $0x4] sm:$0xf0]  }
  0x9e   : > { %428 = vst.msk [vmem:[#allocation2 + $0xc] sm:$0xf] %vm351_vm2, %v420_v29  ;;  %v463_v31 = vunpack.c.l.b16 %v420_v29  ;;  %v2454_v12 = vor.u32 %v2494_v9, %v2453_v8 }
  0xa0   : > { %v406_v32 = vpop.f32.mrf.mxu3  ;;  %v470_v34 = vpack.c.b16 %v463_v31, %v462_v28  ;;  %v553_v14 = vshrl.u32 %v2454_v12, 16  ;;  %v556_v15 = vshll.u32 %v2454_v12, 16  ;;  %v655_v31 = vunpack.c.l.b16 %v444_v20 }
  0xa1   : > { %v2688_v33 = vadd.f32 %v2667_v19, %v406_v32 }
  0xa2   : > { %2114 = vmatmul.msk.bf16.vlgmr.msra.gmra.mxu1 %vm486_vm3, %v470_v34  ;;  %v555_v25 = vrot.slane %v553_v14, 3  ;;  %v558_v26 = vrot.slane %v556_v15, 4 }
  0xa3   : > { %v422_v35 = vpack.c.bf16 %v2688_v33, %v2688_v33 }
  0xa4   : > { %v559_v32 = vor.u32 %v558_v26, %v555_v25 }
  0xa5   : > { %430 = vst.msk [vmem:[#allocation2 + $0x14] sm:$0xf] %vm351_vm2, %v422_v35  ;;  %v2441_v36 = vld [vmem:[#allocation2 + $0x8] sm:$0xff]   ;;  %v465_v45 = vunpack.c.l.b16 %v422_v35  ;;  %v660_v35 = vpack.c.b16 %v655_v31, %v655_v31 }
  0xa6   : > { %v665_v37 = vshll.u32 %v2441_v36, 16  ;;  %v663_v40 = vshrl.u32 %v2441_v36, 16  ;;  %v2496_v11 = vld [vmem:[#allocation2 + $0xc] sm:$0xff]  }
  0xa7   : > { %v471_v53 = vpack.c.b16 %v465_v45, %v464_v48  ;;  %v561_v16 = vshrl.u32 %v2496_v11, 16  ;;  %v564_v17 = vshll.u32 %v2496_v11, 16 }
  0xa8   : > { %v409_v38 = vpop.f32.mrf.mxu3  ;;  %v667_v41 = vrot.slane %v665_v37, 1 }
  0xa9   : > { %v2695_v39 = vadd.f32 %v2667_v19, %v409_v38  ;;  %v563_v28 = vrot.slane %v561_v16, 3  ;;  %v566_v29 = vrot.slane %v564_v17, 4  ;;  %v694_v38 = vshll.u32 %v660_v35, 16  ;;  %v2531_v17 = vld [vmem:[%s3058_s4] ss:$0 sm:$0xff] }
  0xaa   : > { %v668_v46 = vor.u32 %v667_v41, %v663_v40 }
  0xab   : > { %v423_v43 = vpack.c.bf16 %v2695_v39, %v2695_v39  ;;  %v567_v34 = vor.u32 %v566_v29, %v563_v28 }
  0xac   : > { %v2442_v44 = vld [vmem:[#allocation2 + $0x10] sm:$0xff]  }
  0xad   : > { %431 = vst.msk [vmem:[#allocation2 + $0x18] sm:$0xf] %vm351_vm2, %v423_v43  ;;  %v670_v47 = vshll.u32 %v2442_v44, 16  ;;  %v466_v55 = vunpack.c.l.b16 %v423_v43  ;;  %v674_v62 = vshrl.u32 %v2442_v44, 16  ;;  %v568_v36 = vsel %vm551_vm5, %v559_v32, %v567_v34 }
  0xae   : > { %v696_v44 = vrot.slane %v694_v38, 1 }
  0xaf   : > { %v672_v49 = vrot.slane %v670_v47, 1 }
  0xb0   : > { %v411_v50 = vpop.f32.mrf.mxu3 }
  0xb1   : > { %v2701_v51 = vadd.f32 %v2667_v19, %v411_v50  ;;  %v673_v52 = vsel %vm661_vm4, %v668_v46, %v672_v49  ;;  %v676_v0 = vor.u32 %v674_v62, %v672_v49 }
  0xb2   : > { %2138 = vmatmul.msk.bf16.vlgmr.msrb.gmra.mxu3 %vm486_vm3, %v673_v52  ;;  %2115 = vmatmul.msk.bf16.gmra.mxu1 %vm486_vm3, %v471_v53 }
  0xb3   : > { %v424_v54 = vpack.c.bf16 %v2701_v51, %v2701_v51 }
  0xb4   : > { %v2498_v37 = vld [vmem:[#allocation2 + $0x14] sm:$0xff]  }
  0xb5   : > { %432 = vst.msk [vmem:[#allocation2 + $0x1c] sm:$0xf] %vm351_vm2, %v424_v54  ;;  %v467_v56 = vunpack.c.l.b16 %v424_v54  ;;  %v570_v41 = vshrl.u32 %v2498_v37, 16  ;;  %v573_v42 = vshll.u32 %v2498_v37, 16 }
  0xb7   : > { %v472_v57 = vpack.c.b16 %v467_v56, %v466_v55  ;;  %v572_v45 = vrot.slane %v570_v41, 3  ;;  %v575_v46 = vrot.slane %v573_v42, 4 }
  0xb8   : > { %v414_v58 = vpop.f32.mrf.mxu3 }
  0xb9   : > { %v2710_v59 = vadd.f32 %v2667_v19, %v414_v58  ;;  %2116 = vmatmul.msk.bf16.vlgmr.msra.gmra.mxu2 %vm486_vm3, %v472_v57  ;;  %v576_v48 = vor.u32 %v575_v46, %v572_v45 }
  0xbb   : > { %v425_v60 = vpack.c.bf16 %v2710_v59, %v2710_v59  ;;  %v577_v49 = vsel %vm551_vm5, %v567_v34, %v576_v48 }
  0xbc   : > { %v2443_v61 = vld [vmem:[#allocation2 + $0x18] sm:$0xff]  }
  0xbd   : > { %433 = vst.msk [vmem:[#allocation2 + $0x20] sm:$0xf] %vm351_vm2, %v425_v60  ;;  %v678_v63 = vshll.u32 %v2443_v61, 16  ;;  %v468_v6 = vunpack.c.l.b16 %v425_v60  ;;  %v682_v18 = vshrl.u32 %v2443_v61, 16 }
  0xbf   : > { %v680_v1 = vrot.slane %v678_v63, 1 }
  0xc0   : > { %v416_v2 = vpop.f32.mrf.mxu3 }
  0xc1   : > { %v2717_v3 = vadd.f32 %v2667_v19, %v416_v2  ;;  %v681_v4 = vsel %vm661_vm4, %v676_v0, %v680_v1  ;;  %v684_v22 = vor.u32 %v682_v18, %v680_v1 }
  0xc2   : > { %2139 = vmatmul.msk.bf16.gmra.mxu3 %vm486_vm3, %v681_v4 }
  0xc3   : > { %v426_v5 = vpack.c.bf16 %v2717_v3, %v2717_v3 }
  0xc4   : > { %v2499_v50 = vld [vmem:[#allocation2 + $0x1c] sm:$0xff]  }
  0xc5   : > { %434 = vst.msk [vmem:[#allocation2 + $0x24] sm:$0xf] %vm351_vm2, %v426_v5  ;;  %v469_v7 = vunpack.c.l.b16 %v426_v5  ;;  %v579_v52 = vshrl.u32 %v2499_v50, 16  ;;  %v582_v53 = vshll.u32 %v2499_v50, 16  ;;  %v2367_v5 = vld [vmem:[%s3059_s5 + $0x8] sm:$0xff] }
  0xc6   : > { %821 = vmatpush.bf16.msrb.mxu0 %v2367_v5  ;;  %v2374_v50 = vld [vmem:[#allocation3 + $0x58] sm:$0xff] }
  0xc7   : > { %v473_v10 = vpack.c.b16 %v469_v7, %v468_v6  ;;  %v581_v54 = vrot.slane %v579_v52, 3  ;;  %v584_v55 = vrot.slane %v582_v53, 4  ;;  %v2366_v7 = vld [vmem:[%s3059_s5] sm:$0xff]  ;;  %1105 = vmatpush.bf16.msra.mxu3 %v2374_v50 }
  0xc9   : > { %2117 = vmatmul.msk.bf16.gmra.mxu2 %vm486_vm3, %v473_v10  ;;  %v585_v56 = vor.u32 %v584_v55, %v581_v54 }
  0xca   : > { %822 = vmatpush.bf16.msrb.mxu0 %v2366_v7 }
  0xcb   : > { %v586_v58 = vsel %vm551_vm5, %v576_v48, %v585_v56 }
  0xcc   : > { %v2444_v13 = vld [vmem:[#allocation2 + $0x20] sm:$0xff]  }
  0xcd   : > { %v686_v19 = vshll.u32 %v2444_v13, 16  ;;  %v690_v40 = vshrl.u32 %v2444_v13, 16  ;;  %v2416_v57 = vunpack.c.h.b16 %v2444_v13 }
  0xcf   : > { %v688_v23 = vrot.slane %v686_v19, 1  ;;  %v550_v60 = vpack.c.b16 %v2416_v57, %v2416_v57 }
  0xd1   : > { %v689_v30 = vsel %vm661_vm4, %v684_v22, %v688_v23  ;;  %v692_v43 = vor.u32 %v690_v40, %v688_v23  ;;  %v588_v61 = vshrl.u32 %v550_v60, 16  ;;  %v591_v62 = vshll.u32 %v550_v60, 16 }
  0xd2   : > { %2140 = vmatmul.msk.bf16.gmra.mxu3 %vm486_vm3, %v689_v30 }
  0xd3   : > { %v697_v47 = vsel %vm661_vm4, %v692_v43, %v696_v44  ;;  %v590_v63 = vrot.slane %v588_v61, 3  ;;  %v593_v0 = vrot.slane %v591_v62, 4 }
  0xd5   : > { %v594_v1 = vor.u32 %v593_v0, %v590_v63 }
  0xd7   : > { %v595_v2 = vsel %vm551_vm5, %v585_v56, %v594_v1 }
  0xd9   : > { %2126 = vmatmul.msk.bf16.vlgmr.msrb.gmra.mxu2 %vm486_vm3, %v568_v36 }
  0xe2   : > { %2141 = vmatmul.msk.bf16.gmra.mxu3 %vm486_vm3, %v697_v47 }
  0xe9   : > { %2127 = vmatmul.msk.bf16.gmra.mxu2 %vm486_vm3, %v577_v49  ;;  %v2370_v49 = vld [vmem:[#allocation3 + $0x38] sm:$0xff] }
  0xea   : > { %1026 = vmatpush.bf16.msra.mxu2 %v2370_v49  ;;  %v2168_v49 = vld [vmem:[#allocation2 + $0x4] sm:$0x8] }
  0xf9   : > { %2128 = vmatmul.msk.bf16.gmra.mxu2 %vm486_vm3, %v586_v58 }
 0x109   : > { %2129 = vmatmul.msk.bf16.gmra.mxu2 %vm486_vm3, %v595_v2 }
 0x11f   : > { %v508_v11 = vpop.f32.mrf.mxu1 }
 0x127   : > { %v510_v15 = vpop.f32.mrf.mxu1 }
 0x12f   : > { %v513_v26 = vpop.f32.mrf.mxu1 }
 0x135   : > { %v731_v9 = vpop.f32.mrf.mxu3 }
 0x137   : > { %v515_v36 = vpop.f32.mrf.mxu1 }
 0x13c   : > { %v518_v4 = vpop.f32.mrf.mxu2 }
 0x13d   : > { %v733_v12 = vpop.f32.mrf.mxu3 }
 0x144   : > { %v520_v6 = vpop.f32.mrf.mxu2 }
 0x145   : > { %v736_v18 = vpop.f32.mrf.mxu3 }
 0x14c   : > { %v523_v8 = vpop.f32.mrf.mxu2 }
 0x14d   : > { %v738_v32 = vpop.f32.mrf.mxu3 }
 0x154   : > { %v525_v10 = vpop.f32.mrf.mxu2 }
 0x155   : > { %v741_v42 = vpop.f32.mrf.mxu3 }
 0x15c   : > { %v629_v13 = vpop.f32.mrf.mxu2 }
 0x15d   : > { %v630_v14 = vadd.f32 %v629_v13, %v508_v11  ;;  %v743_v52 = vpop.f32.mrf.mxu3 }
 0x15f   : > { %v751_v16 = vadd.f32 %v731_v9, %v630_v14 }
 0x161   : > { %v763_v22 = vadd.f32 %v2531_v17, %v751_v16  ;;  %v2371_v16 = vld [vmem:[#allocation3 + $0x40] sm:$0xff] }
 0x163   : > { %v771_v28 = vmax.f32 %v763_v22, 0.0 }
 0x164   : > { %v631_v19 = vpop.f32.mrf.mxu2 }
 0x165   : > { %v632_v20 = vadd.f32 %v631_v19, %v510_v15  ;;  %v746_v62 = vpop.f32.mrf.mxu3  ;;  %v2372_v15 = vld [vmem:[#allocation3 + $0x48] sm:$0xff] }
 0x166   : > { %940 = vmatpush.bf16.msrb.mxu1 %v2372_v15 }
 0x167   : > { %v752_v23 = vadd.f32 %v733_v12, %v632_v20 }
 0x169   : > { %v764_v25 = vadd.f32 %v2531_v17, %v752_v23 }
 0x16a   : > { %941 = vmatpush.bf16.msrb.mxu1 %v2371_v16 }
 0x16b   : > { %v772_v29 = vmax.f32 %v764_v25, 0.0 }
 0x16c   : > { %v634_v30 = vpop.f32.mrf.mxu2 }
 0x16d   : > { %v779_v31 = vpack.c.bf16 %v772_v29, %v771_v28  ;;  %v635_v34 = vadd.f32 %v634_v30, %v513_v26  ;;  %v748_v7 = vpop.f32.mrf.mxu3 }
 0x16f   : > { %2150 = vmatmul.msk.bf16.vlgmr.msrb.gmra.mxu0 %vm486_vm3, %v779_v31  ;;  %v753_v35 = vadd.f32 %v736_v18, %v635_v34  ;;  %v2369_v18 = vld [vmem:[#allocation3 + $0x30] sm:$0xff] }
 0x170   : > { %1027 = vmatpush.bf16.msra.mxu2 %v2369_v18 }
 0x171   : > { %v765_v40 = vadd.f32 %v2531_v17, %v753_v35 }
 0x173   : > { %v773_v44 = vmax.f32 %v765_v40, 0.0 }
 0x174   : > { %v636_v37 = vpop.f32.mrf.mxu2 }
 0x175   : > { %v637_v38 = vadd.f32 %v636_v37, %v515_v36 }
 0x177   : > { %v754_v41 = vadd.f32 %v738_v32, %v637_v38 }
 0x179   : > { %v766_v43 = vadd.f32 %v2531_v17, %v754_v41 }
 0x17b   : > { %v774_v45 = vmax.f32 %v766_v43, 0.0 }
 0x17c   : > { %v639_v46 = vpop.f32.mrf.mxu2 }
 0x17d   : > { %v780_v47 = vpack.c.bf16 %v774_v45, %v773_v44  ;;  %v640_v48 = vadd.f32 %v639_v46, %v518_v4 }
 0x17f   : > { %2151 = vmatmul.msk.bf16.gmra.mxu0 %vm486_vm3, %v780_v47  ;;  %v755_v53 = vadd.f32 %v741_v42, %v640_v48 }
 0x181   : > { %v767_v56 = vadd.f32 %v2531_v17, %v755_v53 }
 0x183   : > { %v775_v60 = vmax.f32 %v767_v56, 0.0 }
 0x184   : > { %v641_v54 = vpop.f32.mrf.mxu2 }
 0x185   : > { %v642_v55 = vadd.f32 %v641_v54, %v520_v6 }
 0x187   : > { %v756_v57 = vadd.f32 %v743_v52, %v642_v55 }
 0x189   : > { %v768_v58 = vadd.f32 %v2531_v17, %v756_v57 }
 0x18b   : > { %v776_v61 = vmax.f32 %v768_v58, 0.0 }
 0x18c   : > { %v644_v63 = vpop.f32.mrf.mxu2 }
 0x18d   : > { %v781_v0 = vpack.c.bf16 %v776_v61, %v775_v60  ;;  %v645_v1 = vadd.f32 %v644_v63, %v523_v8  ;;  %v2373_v8 = vld [vmem:[#allocation3 + $0x50] sm:$0xff] }
 0x18e   : > { %1106 = vmatpush.bf16.msra.mxu3 %v2373_v8 }
 0x18f   : > { %2152 = vmatmul.msk.bf16.gmra.mxu0 %vm486_vm3, %v781_v0  ;;  %v757_v2 = vadd.f32 %v746_v62, %v645_v1 }
 0x191   : > { %v769_v9 = vadd.f32 %v2531_v17, %v757_v2 }
 0x193   : > { %v777_v13 = vmax.f32 %v769_v9, 0.0 }
 0x194   : > { %v646_v4 = vpop.f32.mrf.mxu2 }
 0x195   : > { %v647_v5 = vadd.f32 %v646_v4, %v525_v10  ;;  %v2753_v10 = vld [vmem:[%s3060_s6] ss:$0 sm:$0xff] }
 0x197   : > { %v758_v11 = vadd.f32 %v748_v7, %v647_v5 }
 0x199   : > { %v770_v12 = vadd.f32 %v2531_v17, %v758_v11 }
 0x19b   : > { %v778_v6 = vmax.f32 %v770_v12, 0.0 }
 0x19d   : > { %v782_v14 = vpack.c.bf16 %v778_v6, %v777_v13 }
 0x19f   : > { %2153 = vmatmul.msk.bf16.gmra.mxu0 %vm486_vm3, %v782_v14 }
 0x1ec   : > { %v824_v19 = vpop.f32.mrf.mxu0 }
 0x1ed   : > { %v825_v17 = vadd.f32 %v2753_v10, %v824_v19 }
 0x1ef   : > { %v2757_v20 = vadd.f32 %v825_v17, %v2670_v21 }
 0x1f1   : > { %v852_v22 = vpack.c.bf16 %v2757_v20, %v2757_v20 }
 0x1f3   : > { %860 = vst.msk [vmem:[#allocation2 + $0x8] sm:$0xf] %vm351_vm2, %v852_v22  ;;  %v898_v29 = vunpack.c.l.b16 %v852_v22  ;;  %v2376_v22 = vld [vmem:[%s3059_s5 + $0x18] sm:$0xff] }
 0x1f4   : > { %v826_v23 = vpop.f32.mrf.mxu0  ;;  %1201 = vmatpush.bf16.msra.mxu0 %v2376_v22  ;;  %v2379_v22 = vld [vmem:[#allocation3 + $0x68] sm:$0xff] }
 0x1f5   : > { %v827_v25 = vadd.f32 %v2753_v10, %v826_v23  ;;  %1406 = vmatpush.bf16.msrb.mxu2 %v2379_v22 }
 0x1f7   : > { %v2764_v26 = vadd.f32 %v827_v25, %v2681_v27 }
 0x1f9   : > { %v853_v28 = vpack.c.bf16 %v2764_v26, %v2764_v26 }
 0x1fa   : > { %v877_v41 = vld [vmem:[#allocation2 + $0x8] sm:$0xe] }
 0x1fb   : > { %861 = vst.msk [vmem:[#allocation2 + $0xc] sm:$0xf] %vm351_vm2, %v853_v28  ;;  %v899_v30 = vunpack.c.l.b16 %v853_v28  ;;  %v1057_v47 = vunpack.c.l.b16 %v877_v41  ;;  %v2368_v50 = vld [vmem:[#allocation2 + $0x4] sm:$0xf0] }
 0x1fc   : > { %v829_v21 = vpop.f32.mrf.mxu0  ;;  %v2169_v57 = vor.u32 %v2368_v50, %v2168_v49 }
 0x1fd   : > { %v830_v31 = vadd.f32 %v2753_v10, %v829_v21  ;;  %v906_v32 = vpack.c.b16 %v899_v30, %v898_v29 }
 0x1fe   : > { %v987_v63 = vrot.slane %v2169_v57, 3 }
 0x1ff   : > { %v2771_v34 = vadd.f32 %v830_v31, %v2676_v24  ;;  %2162 = vmatmul.msk.bf16.vlgmr.msrb.gmra.mxu1 %vm486_vm3, %v906_v32  ;;  %v879_v31 = vld [vmem:[#allocation2 + $0x28] sm:$0x1] }
 0x201   : > { %v854_v27 = vpack.c.bf16 %v2771_v34, %v2771_v34 }
 0x202   : > { %v870_v38 = vld [vmem:[#allocation2 + $0xc] sm:$0xf] }
 0x203   : > { %862 = vst.msk [vmem:[#allocation2 + $0x10] sm:$0xf] %vm351_vm2, %v854_v27  ;;  %v900_v24 = vunpack.c.l.b16 %v854_v27  ;;  %v974_v43 = vunpack.c.l.b16 %v870_v38  ;;  %v1059_v27 = vunpack.c.l.b16 %v879_v31 }
 0x204   : > { %v831_v35 = vpop.f32.mrf.mxu0 }
 0x205   : > { %v832_v36 = vadd.f32 %v2753_v10, %v831_v35 }
 0x207   : > { %v2779_v37 = vadd.f32 %v832_v36, %v2688_v33  ;;  %v1060_v33 = vpack.c.b16 %v974_v43, %v1057_v47  ;;  %v1064_v36 = vpack.c.b16 %v1059_v27, %v1059_v27 }
 0x209   : > { %v855_v40 = vpack.c.bf16 %v2779_v37, %v2779_v37  ;;  %v1066_v54 = vrot.slane %v1060_v33, 1 }
 0x20b   : > { %863 = vst.msk [vmem:[#allocation2 + $0x14] sm:$0xf] %vm351_vm2, %v855_v40  ;;  %v901_v42 = vunpack.c.l.b16 %v855_v40  ;;  %v1073_v40 = vrot.slane %v1064_v36, 1 }
 0x20c   : > { %v834_v44 = vpop.f32.mrf.mxu0 }
 0x20d   : > { %v835_v45 = vadd.f32 %v2753_v10, %v834_v44  ;;  %v907_v46 = vpack.c.b16 %v901_v42, %v900_v24  ;;  %v2375_v44 = vld [vmem:[%s3059_s5 + $0x10] sm:$0xff] }
 0x20e   : > { %1202 = vmatpush.bf16.msra.mxu0 %v2375_v44 }
 0x20f   : > { %v2786_v48 = vadd.f32 %v835_v45, %v2695_v39  ;;  %2163 = vmatmul.msk.bf16.gmra.mxu1 %vm486_vm3, %v907_v46 }
 0x211   : > { %v856_v52 = vpack.c.bf16 %v2786_v48, %v2786_v48 }
 0x212   : > { %v2445_v53 = vld [vmem:[#allocation2 + $0x10] sm:$0xff]  }
 0x213   : > { %864 = vst.msk [vmem:[#allocation2 + $0x18] sm:$0xf] %vm351_vm2, %v856_v52  ;;  %v1067_v55 = vrot.slane %v2445_v53, 1  ;;  %v2419_v56 = vunpack.c.l.b16 %v2445_v53  ;;  %v902_v4 = vunpack.c.l.b16 %v856_v52 }
 0x214   : > { %v836_v58 = vpop.f32.mrf.mxu0 }
 0x215   : > { %v837_v39 = vadd.f32 %v2753_v10, %v836_v58  ;;  %v1068_v60 = vsel %vm1065_vm6, %v1066_v54, %v1067_v55  ;;  %v982_v61 = vpack.c.b16 %v2419_v56, %v974_v43  ;;  %v2533_v54 = vld [vmem:[%s3058_s4 + $0x1] ss:$0 sm:$0xff] }
 0x216   : > { %2190 = vmatmul.msk.bf16.vlgmr.msra.gmra.mxu3 %vm486_vm3, %v1068_v60 }
 0x217   : > { %v2796_v62 = vadd.f32 %v837_v39, %v2701_v51  ;;  %v988_v0 = vrot.slane %v982_v61, 3 }
 0x219   : > { %v857_v1 = vpack.c.bf16 %v2796_v62, %v2796_v62  ;;  %v989_v2 = vsel %vm986_vm7, %v987_v63, %v988_v0 }
 0x21a   : > { %2178 = vmatmul.msk.bf16.vlgmr.msra.gmra.mxu2 %vm486_vm3, %v989_v2  ;;  %v2502_v13 = vld [vmem:[#allocation2 + $0x14] sm:$0xff]  }
 0x21b   : > { %865 = vst.msk [vmem:[#allocation2 + $0x1c] sm:$0xf] %vm351_vm2, %v857_v1  ;;  %v903_v5 = vunpack.c.l.b16 %v857_v1  ;;  %v990_v8 = vrot.slane %v2502_v13, 3 }
 0x21c   : > { %v839_v7 = vpop.f32.mrf.mxu0 }
 0x21d   : > { %v840_v9 = vadd.f32 %v2753_v10, %v839_v7  ;;  %v908_v11 = vpack.c.b16 %v903_v5, %v902_v4  ;;  %v991_v17 = vsel %vm986_vm7, %v988_v0, %v990_v8 }
 0x21f   : > { %v2805_v51 = vadd.f32 %v840_v9, %v2710_v59  ;;  %2164 = vmatmul.msk.bf16.gmra.mxu1 %vm486_vm3, %v908_v11 }
 0x221   : > { %v858_v12 = vpack.c.bf16 %v2805_v51, %v2805_v51 }
 0x222   : > { %v2446_v6 = vld [vmem:[#allocation2 + $0x18] sm:$0xff]  }
 0x223   : > { %866 = vst.msk [vmem:[#allocation2 + $0x20] sm:$0xf] %vm351_vm2, %v858_v12  ;;  %v1069_v14 = vrot.slane %v2446_v6, 1 }
 0x224   : > { %v841_v15 = vpop.f32.mrf.mxu0 }
 0x225   : > { %v842_v16 = vadd.f32 %v2753_v10, %v841_v15  ;;  %v1070_v18 = vsel %vm1065_vm6, %v1067_v55, %v1069_v14  ;;  %v904_v10 = vunpack.c.l.b16 %v858_v12 }
 0x226   : > { %2191 = vmatmul.msk.bf16.gmra.mxu3 %vm486_vm3, %v1070_v18 }
 0x227   : > { %v2815_v59 = vadd.f32 %v842_v16, %v2717_v3 }
 0x229   : > { %v859_v19 = vpack.c.bf16 %v2815_v59, %v2815_v59 }
 0x22a   : > { %2179 = vmatmul.msk.bf16.gmra.mxu2 %vm486_vm3, %v991_v17  ;;  %v2503_v3 = vld [vmem:[#allocation2 + $0x1c] sm:$0xff]  }
 0x22b   : > { %867 = vst.msk [vmem:[#allocation2 + $0x24] sm:$0xf] %vm351_vm2, %v859_v19  ;;  %v905_v23 = vunpack.c.l.b16 %v859_v19  ;;  %v992_v21 = vrot.slane %v2503_v3, 3 }
 0x22d   : > { %v909_v25 = vpack.c.b16 %v905_v23, %v904_v10  ;;  %v993_v32 = vsel %vm986_vm7, %v990_v8, %v992_v21  ;;  %v2383_v10 = vld [vmem:[#allocation3 + $0x88] sm:$0xff]  ;;  %v2381_v23 = vld [vmem:[#allocation3 + $0x78] sm:$0xff] }
 0x22e   : > { %1484 = vmatpush.bf16.msrb.mxu3 %v2383_v10  ;;  %1320 = vmatpush.bf16.msra.mxu1 %v2381_v23 }
 0x22f   : > { %2165 = vmatmul.msk.bf16.gmra.mxu1 %vm486_vm3, %v909_v25 }
 0x232   : > { %v2447_v28 = vld [vmem:[#allocation2 + $0x20] sm:$0xff]  }
 0x233   : > { %v1071_v29 = vrot.slane %v2447_v28, 1  ;;  %v876_v35 = vld [vmem:[#allocation2 + $0x24] sm:$0x7] }
 0x234   : > { %v980_v38 = vunpack.c.l.b16 %v876_v35 }
 0x235   : > { %v1072_v30 = vsel %vm1065_vm6, %v1069_v14, %v1071_v29  ;;  %v1074_v24 = vsel %vm1065_vm6, %v1071_v29, %v1073_v40 }
 0x236   : > { %2192 = vmatmul.msk.bf16.gmra.mxu3 %vm486_vm3, %v1072_v30  ;;  %v985_v41 = vpack.c.b16 %v980_v38, %v980_v38 }
 0x238   : > { %v994_v42 = vrot.slane %v985_v41, 3 }
 0x23a   : > { %2180 = vmatmul.msk.bf16.gmra.mxu2 %vm486_vm3, %v993_v32  ;;  %v995_v43 = vsel %vm986_vm7, %v992_v21, %v994_v42 }
 0x246   : > { %2193 = vmatmul.msk.bf16.gmra.mxu3 %vm486_vm3, %v1074_v24 }
 0x24a   : > { %2181 = vmatmul.msk.bf16.gmra.mxu2 %vm486_vm3, %v995_v43 }
 0x27c   : > { %v943_v45 = vpop.f32.mrf.mxu1 }
 0x284   : > { %v945_v46 = vpop.f32.mrf.mxu1 }
 0x28c   : > { %v948_v52 = vpop.f32.mrf.mxu1 }
 0x294   : > { %v950_v0 = vpop.f32.mrf.mxu1 }
 0x299   : > { %v1108_v47 = vpop.f32.mrf.mxu3 }
 0x29c   : > { %v953_v12 = vpop.f32.mrf.mxu1 }
 0x29d   : > { %v1029_v33 = vpop.f32.mrf.mxu2 }
 0x29e   : > { %v1030_v49 = vadd.f32 %v1029_v33, %v943_v45 }
 0x2a0   : > { %v1128_v53 = vadd.f32 %v1108_v47, %v1030_v49 }
 0x2a1   : > { %v1110_v50 = vpop.f32.mrf.mxu3 }
 0x2a2   : > { %v1141_v57 = vadd.f32 %v2533_v54, %v1128_v53 }
 0x2a4   : > { %v1149_v61 = vmax.f32 %v1141_v57, 0.0  ;;  %v955_v25 = vpop.f32.mrf.mxu1  ;;  %v2382_v57 = vld [vmem:[#allocation3 + $0x80] sm:$0xff] }
 0x2a5   : > { %v1031_v55 = vpop.f32.mrf.mxu2  ;;  %1485 = vmatpush.bf16.msrb.mxu3 %v2382_v57 }
 0x2a6   : > { %v1032_v56 = vadd.f32 %v1031_v55, %v945_v46  ;;  %v2380_v55 = vld [vmem:[#allocation3 + $0x70] sm:$0xff] }
 0x2a7   : > { %1321 = vmatpush.bf16.msra.mxu1 %v2380_v55 }
 0x2a8   : > { %v1129_v58 = vadd.f32 %v1110_v50, %v1032_v56  ;;  %v2378_v56 = vld [vmem:[#allocation3 + $0x60] sm:$0xff] }
 0x2a9   : > { %v1113_v39 = vpop.f32.mrf.mxu3  ;;  %1407 = vmatpush.bf16.msrb.mxu2 %v2378_v56 }
 0x2aa   : > { %v1142_v60 = vadd.f32 %v2533_v54, %v1129_v58  ;;  %v2847_v58 = vld [vmem:[%s3060_s6 + $0x1] ss:$0 sm:$0xff] }
 0x2ac   : > { %v1150_v63 = vmax.f32 %v1142_v60, 0.0  ;;  %v958_v27 = vpop.f32.mrf.mxu1 }
 0x2ad   : > { %v1034_v1 = vpop.f32.mrf.mxu2 }
 0x2ae   : > { %v1157_v2 = vpack.c.bf16 %v1150_v63, %v1149_v61  ;;  %v1035_v4 = vadd.f32 %v1034_v1, %v948_v52 }
 0x2b0   : > { %2208 = vmatmul.msk.bf16.vlgmr.msra.gmra.mxu0 %vm486_vm3, %v1157_v2  ;;  %v1130_v7 = vadd.f32 %v1113_v39, %v1035_v4 }
 0x2b1   : > { %v1115_v5 = vpop.f32.mrf.mxu3 }
 0x2b2   : > { %v1143_v13 = vadd.f32 %v2533_v54, %v1130_v7 }
 0x2b4   : > { %v1151_v16 = vmax.f32 %v1143_v13, 0.0  ;;  %v960_v43 = vpop.f32.mrf.mxu1 }
 0x2b5   : > { %v1036_v9 = vpop.f32.mrf.mxu2 }
 0x2b6   : > { %v1037_v11 = vadd.f32 %v1036_v9, %v950_v0 }
 0x2b8   : > { %v1131_v6 = vadd.f32 %v1115_v5, %v1037_v11 }
 0x2b9   : > { %v1118_v14 = vpop.f32.mrf.mxu3 }
 0x2ba   : > { %v1144_v15 = vadd.f32 %v2533_v54, %v1131_v6 }
 0x2bc   : > { %v1152_v18 = vmax.f32 %v1144_v15, 0.0 }
 0x2bd   : > { %v1039_v8 = vpop.f32.mrf.mxu2 }
 0x2be   : > { %v1158_v19 = vpack.c.bf16 %v1152_v18, %v1151_v16  ;;  %v1040_v17 = vadd.f32 %v1039_v8, %v953_v12 }
 0x2c0   : > { %2209 = vmatmul.msk.bf16.gmra.mxu0 %vm486_vm3, %v1158_v19  ;;  %v1132_v28 = vadd.f32 %v1118_v14, %v1040_v17 }
 0x2c1   : > { %v1120_v3 = vpop.f32.mrf.mxu3 }
 0x2c2   : > { %v1145_v21 = vadd.f32 %v2533_v54, %v1132_v28 }
 0x2c4   : > { %v1153_v35 = vmax.f32 %v1145_v21, 0.0 }
 0x2c5   : > { %v1041_v29 = vpop.f32.mrf.mxu2 }
 0x2c6   : > { %v1042_v30 = vadd.f32 %v1041_v29, %v955_v25  ;;  %v2226_v25 = vld [vmem:[#allocation2 + $0x4] sm:$0xc] }
 0x2c8   : > { %v1133_v31 = vadd.f32 %v1120_v3, %v1042_v30 }
 0x2c9   : > { %v1123_v38 = vpop.f32.mrf.mxu3 }
 0x2ca   : > { %v1146_v32 = vadd.f32 %v2533_v54, %v1133_v31 }
 0x2cc   : > { %v1154_v36 = vmax.f32 %v1146_v32, 0.0 }
 0x2cd   : > { %v1044_v40 = vpop.f32.mrf.mxu2 }
 0x2ce   : > { %v1159_v41 = vpack.c.bf16 %v1154_v36, %v1153_v35  ;;  %v1045_v24 = vadd.f32 %v1044_v40, %v958_v27 }
 0x2d0   : > { %2210 = vmatmul.msk.bf16.gmra.mxu0 %vm486_vm3, %v1159_v41  ;;  %v1134_v42 = vadd.f32 %v1123_v38, %v1045_v24 }
 0x2d1   : > { %v1125_v46 = vpop.f32.mrf.mxu3 }
 0x2d2   : > { %v1147_v47 = vadd.f32 %v2533_v54, %v1134_v42 }
 0x2d4   : > { %v1155_v50 = vmax.f32 %v1147_v47, 0.0 }
 0x2d5   : > { %v1046_v44 = vpop.f32.mrf.mxu2 }
 0x2d6   : > { %v1047_v45 = vadd.f32 %v1046_v44, %v960_v43 }
 0x2d8   : > { %v1135_v33 = vadd.f32 %v1125_v46, %v1047_v45 }
 0x2da   : > { %v1148_v49 = vadd.f32 %v2533_v54, %v1135_v33 }
 0x2dc   : > { %v1156_v52 = vmax.f32 %v1148_v49, 0.0 }
 0x2de   : > { %v1160_v53 = vpack.c.bf16 %v1156_v52, %v1155_v50 }
 0x2e0   : > { %2211 = vmatmul.msk.bf16.gmra.mxu0 %vm486_vm3, %v1160_v53 }
 0x32d   : > { %v1204_v39 = vpop.f32.mrf.mxu0 }
 0x32e   : > { %v1205_v60 = vadd.f32 %v2847_v58, %v1204_v39 }
 0x330   : > { %v2851_v54 = vadd.f32 %v1205_v60, %v2757_v20 }
 0x332   : > { %v1232_v61 = vpack.c.bf16 %v2851_v54, %v2851_v54 }
 0x334   : > { %1240 = vst.msk [vmem:[#allocation2 + $0x8] sm:$0xf] %vm351_vm2, %v1232_v61  ;;  %v1278_v4 = vunpack.c.l.b16 %v1232_v61  ;;  %v2385_v61 = vld [vmem:[%s3059_s5 + $0x28] sm:$0xff] }
 0x335   : > { %v1206_v63 = vpop.f32.mrf.mxu0  ;;  %1580 = vmatpush.bf16.msrb.mxu0 %v2385_v61  ;;  %v2392_v61 = vld [vmem:[#allocation3 + $0x98] sm:$0xff] }
 0x336   : > { %v1207_v0 = vadd.f32 %v2847_v58, %v1206_v63  ;;  %1770 = vmatpush.bf16.msra.mxu2 %v2392_v61 }
 0x338   : > { %v2858_v1 = vadd.f32 %v1207_v0, %v2764_v26 }
 0x33a   : > { %v1233_v2 = vpack.c.bf16 %v2858_v1, %v2858_v1 }
 0x33b   : > { %v1257_v16 = vld [vmem:[#allocation2 + $0x8] sm:$0xc] }
 0x33c   : > { %1241 = vst.msk [vmem:[#allocation2 + $0xc] sm:$0xf] %vm351_vm2, %v1233_v2  ;;  %v1279_v5 = vunpack.c.l.b16 %v1233_v2  ;;  %v1437_v10 = vunpack.c.l.b16 %v1257_v16  ;;  %v2377_v3 = vld [vmem:[#allocation2 + $0x4] sm:$0xf0] }
 0x33d   : > { %v1209_v20 = vpop.f32.mrf.mxu0  ;;  %v2227_v32 = vor.u32 %v2377_v3, %v2226_v25 }
 0x33e   : > { %v1286_v7 = vpack.c.b16 %v1279_v5, %v1278_v4  ;;  %v1210_v9 = vadd.f32 %v2847_v58, %v1209_v20 }
 0x33f   : > { %v1367_v40 = vrot.slane %v2227_v32, 2 }
 0x340   : > { %v2865_v11 = vadd.f32 %v1210_v9, %v2771_v34  ;;  %2220 = vmatmul.msk.bf16.vlgmr.msra.gmra.mxu1 %vm486_vm3, %v1286_v7  ;;  %v1259_v7 = vld [vmem:[#allocation2 + $0x28] sm:$0x3] }
 0x342   : > { %v1234_v26 = vpack.c.bf16 %v2865_v11, %v2865_v11 }
 0x343   : > { %v1250_v14 = vld [vmem:[#allocation2 + $0xc] sm:$0xf] }
 0x344   : > { %1242 = vst.msk [vmem:[#allocation2 + $0x10] sm:$0xf] %vm351_vm2, %v1234_v26  ;;  %v1280_v34 = vunpack.c.l.b16 %v1234_v26  ;;  %v1354_v8 = vunpack.c.l.b16 %v1250_v14  ;;  %v1439_v26 = vunpack.c.l.b16 %v1259_v7 }
 0x345   : > { %v1211_v12 = vpop.f32.mrf.mxu0 }
 0x346   : > { %v1212_v13 = vadd.f32 %v2847_v58, %v1211_v12 }
 0x348   : > { %v2873_v6 = vadd.f32 %v1212_v13, %v2779_v37  ;;  %v1440_v37 = vpack.c.b16 %v1354_v8, %v1437_v10  ;;  %v1444_v13 = vpack.c.b16 %v1439_v26, %v1439_v26 }
 0x34a   : > { %v1235_v15 = vpack.c.bf16 %v2873_v6, %v2873_v6  ;;  %v1445_v30 = vrot.slane %v1440_v37, 2 }
 0x34c   : > { %1243 = vst.msk [vmem:[#allocation2 + $0x14] sm:$0xf] %vm351_vm2, %v1235_v15  ;;  %v1281_v18 = vunpack.c.l.b16 %v1235_v15  ;;  %v1452_v15 = vrot.slane %v1444_v13, 2 }
 0x34d   : > { %v1214_v19 = vpop.f32.mrf.mxu0 }
 0x34e   : > { %v1215_v17 = vadd.f32 %v2847_v58, %v1214_v19  ;;  %v1287_v22 = vpack.c.b16 %v1281_v18, %v1280_v34  ;;  %v2384_v19 = vld [vmem:[%s3059_s5 + $0x20] sm:$0xff] }
 0x34f   : > { %1581 = vmatpush.bf16.msrb.mxu0 %v2384_v19 }
 0x350   : > { %v2880_v23 = vadd.f32 %v1215_v17, %v2786_v48  ;;  %2221 = vmatmul.msk.bf16.gmra.mxu1 %vm486_vm3, %v1287_v22 }
 0x352   : > { %v1236_v28 = vpack.c.bf16 %v2880_v23, %v2880_v23 }
 0x353   : > { %v2448_v29 = vld [vmem:[#allocation2 + $0x10] sm:$0xff]  }
 0x354   : > { %1244 = vst.msk [vmem:[#allocation2 + $0x18] sm:$0xf] %vm351_vm2, %v1236_v28  ;;  %v1446_v21 = vrot.slane %v2448_v29, 2  ;;  %v2431_v31 = vunpack.c.l.b16 %v2448_v29  ;;  %v1282_v43 = vunpack.c.l.b16 %v1236_v28 }
 0x355   : > { %v1216_v27 = vpop.f32.mrf.mxu0 }
 0x356   : > { %v1217_v48 = vadd.f32 %v2847_v58, %v1216_v27  ;;  %v1447_v35 = vsel %vm1366_vm8, %v1445_v30, %v1446_v21  ;;  %v1362_v36 = vpack.c.b16 %v2431_v31, %v1354_v8  ;;  %v2535_v30 = vld [vmem:[%s3058_s4 + $0x2] ss:$0 sm:$0xff] }
 0x357   : > { %2248 = vmatmul.msk.bf16.vlgmr.msrb.gmra.mxu3 %vm486_vm3, %v1447_v35 }
 0x358   : > { %v2890_v38 = vadd.f32 %v1217_v48, %v2796_v62  ;;  %v1368_v41 = vrot.slane %v1362_v36, 2 }
 0x35a   : > { %v1237_v24 = vpack.c.bf16 %v2890_v38, %v2890_v38  ;;  %v1369_v42 = vsel %vm1366_vm8, %v1367_v40, %v1368_v41 }
 0x35b   : > { %2236 = vmatmul.msk.bf16.vlgmr.msrb.gmra.mxu2 %vm486_vm3, %v1369_v42  ;;  %v2506_v49 = vld [vmem:[#allocation2 + $0x14] sm:$0xff]  }
 0x35c   : > { %1245 = vst.msk [vmem:[#allocation2 + $0x1c] sm:$0xf] %vm351_vm2, %v1237_v24  ;;  %v1283_v44 = vunpack.c.l.b16 %v1237_v24  ;;  %v1370_v57 = vrot.slane %v2506_v49, 2 }
 0x35d   : > { %v1219_v45 = vpop.f32.mrf.mxu0 }
 0x35e   : > { %v1220_v46 = vadd.f32 %v2847_v58, %v1219_v45  ;;  %v1288_v47 = vpack.c.b16 %v1283_v44, %v1282_v43  ;;  %v1371_v60 = vsel %vm1366_vm8, %v1368_v41, %v1370_v57 }
 0x360   : > { %v2899_v62 = vadd.f32 %v1220_v46, %v2805_v51  ;;  %2222 = vmatmul.msk.bf16.gmra.mxu1 %vm486_vm3, %v1288_v47 }
 0x362   : > { %v1238_v33 = vpack.c.bf16 %v2899_v62, %v2899_v62 }
 0x363   : > { %v2449_v50 = vld [vmem:[#allocation2 + $0x18] sm:$0xff]  }
 0x364   : > { %1246 = vst.msk [vmem:[#allocation2 + $0x20] sm:$0xf] %vm351_vm2, %v1238_v33  ;;  %v1448_v52 = vrot.slane %v2449_v50, 2 }
 0x365   : > { %v1221_v53 = vpop.f32.mrf.mxu0 }
 0x366   : > { %v1222_v55 = vadd.f32 %v2847_v58, %v1221_v53  ;;  %v1449_v56 = vsel %vm1366_vm8, %v1446_v21, %v1448_v52  ;;  %v1284_v58 = vunpack.c.l.b16 %v1238_v33 }
 0x367   : > { %2249 = vmatmul.msk.bf16.gmra.mxu3 %vm486_vm3, %v1449_v56 }
 0x368   : > { %v2909_v51 = vadd.f32 %v1222_v55, %v2815_v59 }
 0x36a   : > { %v1239_v39 = vpack.c.bf16 %v2909_v51, %v2909_v51 }
 0x36b   : > { %2237 = vmatmul.msk.bf16.gmra.mxu2 %vm486_vm3, %v1371_v60  ;;  %v2507_v59 = vld [vmem:[#allocation2 + $0x1c] sm:$0xff]  }
 0x36c   : > { %1247 = vst.msk [vmem:[#allocation2 + $0x24] sm:$0xf] %vm351_vm2, %v1239_v39  ;;  %v1285_v63 = vunpack.c.l.b16 %v1239_v39  ;;  %v1372_v20 = vrot.slane %v2507_v59, 2  ;;  %v2391_v59 = vld [vmem:[#allocation3 + $0x90] sm:$0xff] }
 0x36d   : > { %1771 = vmatpush.bf16.msra.mxu2 %v2391_v59 }
 0x36e   : > { %v1289_v0 = vpack.c.b16 %v1285_v63, %v1284_v58  ;;  %v1373_v9 = vsel %vm1366_vm8, %v1370_v57, %v1372_v20  ;;  %v2396_v58 = vld [vmem:[#allocation3 + $0xb8] sm:$0xff]  ;;  %v2394_v63 = vld [vmem:[#allocation3 + $0xa8] sm:$0xff] }
 0x36f   : > { %1824 = vmatpush.bf16.msra.mxu3 %v2396_v58  ;;  %1697 = vmatpush.bf16.msrb.mxu1 %v2394_v63 }
 0x370   : > { %2223 = vmatmul.msk.bf16.gmra.mxu1 %vm486_vm3, %v1289_v0 }
 0x373   : > { %v2450_v2 = vld [vmem:[#allocation2 + $0x20] sm:$0xff]  }
 0x374   : > { %v1450_v4 = vrot.slane %v2450_v2, 2  ;;  %v1256_v12 = vld [vmem:[#allocation2 + $0x24] sm:$0x3] }
 0x375   : > { %v1360_v14 = vunpack.c.l.b16 %v1256_v12 }
 0x376   : > { %v1451_v5 = vsel %vm1366_vm8, %v1448_v52, %v1450_v4  ;;  %v1453_v34 = vsel %vm1366_vm8, %v1450_v4, %v1452_v15 }
 0x377   : > { %2250 = vmatmul.msk.bf16.gmra.mxu3 %vm486_vm3, %v1451_v5  ;;  %v1365_v16 = vpack.c.b16 %v1360_v14, %v1360_v14 }
 0x379   : > { %v1374_v18 = vrot.slane %v1365_v16, 2 }
 0x37b   : > { %2238 = vmatmul.msk.bf16.gmra.mxu2 %vm486_vm3, %v1373_v9  ;;  %v1375_v8 = vsel %vm1366_vm8, %v1372_v20, %v1374_v18 }
 0x387   : > { %2251 = vmatmul.msk.bf16.gmra.mxu3 %vm486_vm3, %v1453_v34 }
 0x38b   : > { %2239 = vmatmul.msk.bf16.gmra.mxu2 %vm486_vm3, %v1375_v8 }
 0x3bd   : > { %v1323_v17 = vpop.f32.mrf.mxu1 }
 0x3c5   : > { %v1325_v22 = vpop.f32.mrf.mxu1 }
 0x3cd   : > { %v1328_v28 = vpop.f32.mrf.mxu1 }
 0x3d5   : > { %v1330_v41 = vpop.f32.mrf.mxu1 }
 0x3da   : > { %v1487_v10 = vpop.f32.mrf.mxu3 }
 0x3dd   : > { %v1333_v33 = vpop.f32.mrf.mxu1 }
 0x3de   : > { %v1409_v37 = vpop.f32.mrf.mxu2 }
 0x3df   : > { %v1410_v25 = vadd.f32 %v1409_v37, %v1323_v17 }
 0x3e1   : > { %v1507_v29 = vadd.f32 %v1487_v10, %v1410_v25 }
 0x3e2   : > { %v1489_v3 = vpop.f32.mrf.mxu3 }
 0x3e3   : > { %v1520_v32 = vadd.f32 %v2535_v30, %v1507_v29 }
 0x3e5   : > { %v1528_v36 = vmax.f32 %v1520_v32, 0.0  ;;  %v1335_v0 = vpop.f32.mrf.mxu1  ;;  %v2393_v32 = vld [vmem:[#allocation3 + $0xa0] sm:$0xff] }
 0x3e6   : > { %v1411_v21 = vpop.f32.mrf.mxu2  ;;  %1698 = vmatpush.bf16.msrb.mxu1 %v2393_v32 }
 0x3e7   : > { %v1412_v31 = vadd.f32 %v1411_v21, %v1325_v22 }
 0x3e9   : > { %v1508_v27 = vadd.f32 %v1489_v3, %v1412_v31  ;;  %v2395_v31 = vld [vmem:[#allocation3 + $0xb0] sm:$0xff] }
 0x3ea   : > { %v1492_v48 = vpop.f32.mrf.mxu3  ;;  %1825 = vmatpush.bf16.msra.mxu3 %v2395_v31 }
 0x3eb   : > { %v1521_v35 = vadd.f32 %v2535_v30, %v1508_v27  ;;  %v2536_v27 = vld [vmem:[%s3060_s6 + $0x2] ss:$0 sm:$0xff] }
 0x3ed   : > { %v1529_v40 = vmax.f32 %v1521_v35, 0.0  ;;  %v1338_v12 = vpop.f32.mrf.mxu1 }
 0x3ee   : > { %v1414_v24 = vpop.f32.mrf.mxu2 }
 0x3ef   : > { %v1536_v42 = vpack.c.bf16 %v1529_v40, %v1528_v36  ;;  %v1415_v43 = vadd.f32 %v1414_v24, %v1328_v28 }
 0x3f1   : > { %2266 = vmatmul.msk.bf16.vlgmr.msrb.gmra.mxu0 %vm486_vm3, %v1536_v42  ;;  %v1509_v45 = vadd.f32 %v1492_v48, %v1415_v43 }
 0x3f2   : > { %v1494_v44 = vpop.f32.mrf.mxu3 }
 0x3f3   : > { %v1522_v49 = vadd.f32 %v2535_v30, %v1509_v45 }
 0x3f5   : > { %v1530_v55 = vmax.f32 %v1522_v49, 0.0  ;;  %v1340_v19 = vpop.f32.mrf.mxu1 }
 0x3f6   : > { %v1416_v46 = vpop.f32.mrf.mxu2 }
 0x3f7   : > { %v1417_v47 = vadd.f32 %v1416_v46, %v1330_v41 }
 0x3f9   : > { %v1510_v50 = vadd.f32 %v1494_v44, %v1417_v47 }
 0x3fa   : > { %v1497_v52 = vpop.f32.mrf.mxu3 }
 0x3fb   : > { %v1523_v53 = vadd.f32 %v2535_v30, %v1510_v50 }
 0x3fd   : > { %v1531_v56 = vmax.f32 %v1523_v53, 0.0 }
 0x3fe   : > { %v1419_v57 = vpop.f32.mrf.mxu2 }
 0x3ff   : > { %v1537_v39 = vpack.c.bf16 %v1531_v56, %v1530_v55  ;;  %v1420_v60 = vadd.f32 %v1419_v57, %v1333_v33 }
 0x401   : > { %2267 = vmatmul.msk.bf16.gmra.mxu0 %vm486_vm3, %v1537_v39  ;;  %v1511_v4 = vadd.f32 %v1497_v52, %v1420_v60 }
 0x402   : > { %v1499_v2 = vpop.f32.mrf.mxu3 }
 0x403   : > { %v1524_v7 = vadd.f32 %v2535_v30, %v1511_v4 }
 0x405   : > { %v1532_v13 = vmax.f32 %v1524_v7, 0.0 }
 0x406   : > { %v1421_v5 = vpop.f32.mrf.mxu2 }
 0x407   : > { %v1422_v20 = vadd.f32 %v1421_v5, %v1335_v0 }
 0x409   : > { %v1512_v9 = vadd.f32 %v1499_v2, %v1422_v20  ;;  %v2398_v20 = vld [vmem:[%s3059_s5 + $0x38] sm:$0xff] }
 0x40a   : > { %v1502_v15 = vpop.f32.mrf.mxu3  ;;  %1920 = vmatpush.bf16.msra.mxu0 %v2398_v20 }
 0x40b   : > { %v1525_v26 = vadd.f32 %v2535_v30, %v1512_v9 }
 0x40d   : > { %v1533_v14 = vmax.f32 %v1525_v26, 0.0 }
 0x40e   : > { %v1424_v16 = vpop.f32.mrf.mxu2 }
 0x40f   : > { %v1538_v34 = vpack.c.bf16 %v1533_v14, %v1532_v13  ;;  %v1425_v18 = vadd.f32 %v1424_v16, %v1338_v12 }
 0x411   : > { %2268 = vmatmul.msk.bf16.gmra.mxu0 %vm486_vm3, %v1538_v34  ;;  %v1513_v8 = vadd.f32 %v1502_v15, %v1425_v18 }
 0x412   : > { %v1504_v10 = vpop.f32.mrf.mxu3 }
 0x413   : > { %v1526_v37 = vadd.f32 %v2535_v30, %v1513_v8 }
 0x415   : > { %v1534_v28 = vmax.f32 %v1526_v37, 0.0 }
 0x416   : > { %v1426_v17 = vpop.f32.mrf.mxu2 }
 0x417   : > { %v1427_v22 = vadd.f32 %v1426_v17, %v1340_v19 }
 0x419   : > { %v1514_v25 = vadd.f32 %v1504_v10, %v1427_v22 }
 0x41b   : > { %v1527_v3 = vadd.f32 %v2535_v30, %v1514_v25 }
 0x41d   : > { %v1535_v29 = vmax.f32 %v1527_v3, 0.0 }
 0x41f   : > { %v1539_v21 = vpack.c.bf16 %v1535_v29, %v1534_v28 }
 0x421   : > { %2269 = vmatmul.msk.bf16.gmra.mxu0 %vm486_vm3, %v1539_v21  ;;  %v2537_v21 = vld [vmem:[%s3058_s4 + $0x3] ss:$0 sm:$0xff] }
 0x46e   : > { %v1583_v48 = vpop.f32.mrf.mxu0 }
 0x46f   : > { %v1584_v35 = vadd.f32 %v2536_v27, %v1583_v48 }
 0x471   : > { %v2942_v36 = vadd.f32 %v1584_v35, %v2851_v54 }
 0x473   : > { %v1611_v30 = vpack.c.bf16 %v2942_v36, %v2942_v36 }
 0x475   : > { %1619 = vst.msk [vmem:[#allocation2 + $0x8] sm:$0xf] %vm351_vm2, %v1611_v30  ;;  %v1655_v44 = vunpack.c.l.b16 %v1611_v30 }
 0x476   : > { %v1585_v40 = vpop.f32.mrf.mxu0 }
 0x477   : > { %v1586_v41 = vadd.f32 %v2536_v27, %v1585_v40 }
 0x479   : > { %v2948_v24 = vadd.f32 %v1586_v41, %v2858_v1 }
 0x47b   : > { %v1612_v42 = vpack.c.bf16 %v2948_v24, %v2948_v24 }
 0x47c   : > { %v2386_v43 = vld [vmem:[#allocation2 + $0x4] sm:$0xff] }
 0x47d   : > { %1620 = vst.msk [vmem:[#allocation2 + $0xc] sm:$0xf] %vm351_vm2, %v1612_v42  ;;  %v1656_v45 = vunpack.c.l.b16 %v1612_v42  ;;  %2306 = vmatmul.msk.bf16.vlgmr.msra.gmra.mxu2 %vm486_vm3, %v2386_v43 }
 0x47e   : > { %v1588_v54 = vpop.f32.mrf.mxu0 }
 0x47f   : > { %v1663_v46 = vpack.c.b16 %v1656_v45, %v1655_v44  ;;  %v1589_v47 = vadd.f32 %v2536_v27, %v1588_v54 }
 0x481   : > { %v2955_v33 = vadd.f32 %v1589_v47, %v2865_v11  ;;  %2278 = vmatmul.msk.bf16.vlgmr.msrb.gmra.mxu1 %vm486_vm3, %v1663_v46 }
 0x483   : > { %v1613_v1 = vpack.c.bf16 %v2955_v33, %v2955_v33 }
 0x485   : > { %1621 = vst.msk [vmem:[#allocation2 + $0x10] sm:$0xf] %vm351_vm2, %v1613_v1  ;;  %v1657_v11 = vunpack.c.l.b16 %v1613_v1 }
 0x486   : > { %v1590_v49 = vpop.f32.mrf.mxu0 }
 0x487   : > { %v1591_v50 = vadd.f32 %v2536_v27, %v1590_v49 }
 0x489   : > { %v2962_v52 = vadd.f32 %v1591_v50, %v2873_v6 }
 0x48b   : > { %v1614_v53 = vpack.c.bf16 %v2962_v52, %v2962_v52 }
 0x48c   : > { %v2387_v55 = vld [vmem:[#allocation2 + $0xc] sm:$0xff] }
 0x48d   : > { %1622 = vst.msk [vmem:[#allocation2 + $0x14] sm:$0xf] %vm351_vm2, %v1614_v53  ;;  %v1658_v56 = vunpack.c.l.b16 %v1614_v53  ;;  %2307 = vmatmul.msk.bf16.gmra.mxu2 %vm486_vm3, %v2387_v55  ;;  %2322 = vmatmul.msk.bf16.vlgmr.msra.gmra.mxu3 %vm486_vm3, %v2387_v55 }
 0x48e   : > { %v1593_v57 = vpop.f32.mrf.mxu0 }
 0x48f   : > { %v1594_v39 = vadd.f32 %v2536_v27, %v1593_v57  ;;  %v1664_v60 = vpack.c.b16 %v1658_v56, %v1657_v11 }
 0x491   : > { %v2970_v61 = vadd.f32 %v1594_v39, %v2880_v23  ;;  %2279 = vmatmul.msk.bf16.gmra.mxu1 %vm486_vm3, %v1664_v60 }
 0x493   : > { %v1615_v6 = vpack.c.bf16 %v2970_v61, %v2970_v61 }
 0x495   : > { %1623 = vst.msk [vmem:[#allocation2 + $0x18] sm:$0xf] %vm351_vm2, %v1615_v6  ;;  %v1659_v4 = vunpack.c.l.b16 %v1615_v6  ;;  %v2400_v6 = vld [vmem:[%s3061_s7 + $0x8] sm:$0xff] }
 0x496   : > { %v1595_v58 = vpop.f32.mrf.mxu0  ;;  %1993 = vmatpush.bf16.msra.mxu1 %v2400_v6 }
 0x497   : > { %v1596_v63 = vadd.f32 %v2536_v27, %v1595_v58 }
 0x499   : > { %v2977_v0 = vadd.f32 %v1596_v63, %v2890_v38 }
 0x49b   : > { %v1616_v59 = vpack.c.bf16 %v2977_v0, %v2977_v0 }
 0x49c   : > { %v2388_v2 = vld [vmem:[#allocation2 + $0x14] sm:$0xff] }
 0x49d   : > { %v1660_v5 = vunpack.c.l.b16 %v1616_v59  ;;  %1624 = vst.msk [vmem:[#allocation2 + $0x1c] sm:$0xf] %vm351_vm2, %v1616_v59  ;;  %2308 = vmatmul.msk.bf16.gmra.mxu2 %vm486_vm3, %v2388_v2  ;;  %2323 = vmatmul.msk.bf16.gmra.mxu3 %vm486_vm3, %v2388_v2  ;;  %v2399_v59 = vld [vmem:[%s3061_s7] sm:$0xff] }
 0x49e   : > { %v1598_v23 = vpop.f32.mrf.mxu0  ;;  %1994 = vmatpush.bf16.msra.mxu1 %v2399_v59 }
 0x49f   : > { %v1599_v7 = vadd.f32 %v2536_v27, %v1598_v23  ;;  %v1665_v38 = vpack.c.b16 %v1660_v5, %v1659_v4 }
 0x4a1   : > { %v2988_v9 = vadd.f32 %v1599_v7, %v2899_v62  ;;  %2280 = vmatmul.msk.bf16.gmra.mxu1 %vm486_vm3, %v1665_v38 }
 0x4a3   : > { %v1617_v26 = vpack.c.bf16 %v2988_v9, %v2988_v9 }
 0x4a5   : > { %1625 = vst.msk [vmem:[#allocation2 + $0x20] sm:$0xf] %vm351_vm2, %v1617_v26  ;;  %v1661_v34 = vunpack.c.l.b16 %v1617_v26 }
 0x4a6   : > { %v1600_v12 = vpop.f32.mrf.mxu0 }
 0x4a7   : > { %v1601_v13 = vadd.f32 %v2536_v27, %v1600_v12 }
 0x4a9   : > { %v2995_v14 = vadd.f32 %v1601_v13, %v2909_v51  ;;  %v2397_v51 = vld [vmem:[%s3059_s5 + $0x30] sm:$0xff] }
 0x4aa   : > { %1921 = vmatpush.bf16.msra.mxu0 %v2397_v51 }
 0x4ab   : > { %v1618_v15 = vpack.c.bf16 %v2995_v14, %v2995_v14 }
 0x4ac   : > { %v2389_v16 = vld [vmem:[#allocation2 + $0x1c] sm:$0xff] }
 0x4ad   : > { %v1662_v18 = vunpack.c.l.b16 %v1618_v15  ;;  %1626 = vst.msk [vmem:[#allocation2 + $0x24] sm:$0xf] %vm351_vm2, %v1618_v15  ;;  %2309 = vmatmul.msk.bf16.gmra.mxu2 %vm486_vm3, %v2389_v16  ;;  %2324 = vmatmul.msk.bf16.gmra.mxu3 %vm486_vm3, %v2389_v16 }
 0x4af   : > { %v1666_v62 = vpack.c.b16 %v1662_v18, %v1661_v34 }
 0x4b1   : > { %2281 = vmatmul.msk.bf16.gmra.mxu1 %vm486_vm3, %v1666_v62 }
 0x4b4   : > { %v2390_v8 = vld [vmem:[#allocation2 + $0x24] sm:$0xff] }
 0x4bd   : > { %2325 = vmatmul.msk.bf16.gmra.mxu3 %vm486_vm3, %v2390_v8 }
 0x4fe   : > { %v1700_v19 = vpop.f32.mrf.mxu1 }
 0x500   : > { %v1773_v17 = vpop.f32.mrf.mxu2 }
 0x501   : > { %v1774_v3 = vadd.f32 %v1773_v17, %v1700_v19 }
 0x506   : > { %v1702_v10 = vpop.f32.mrf.mxu1 }
 0x508   : > { %v1775_v22 = vpop.f32.mrf.mxu2 }
 0x509   : > { %v1776_v31 = vadd.f32 %v1775_v22, %v1702_v10 }
 0x50e   : > { %v1705_v28 = vpop.f32.mrf.mxu1 }
 0x510   : > { %v1827_v37 = vpop.f32.mrf.mxu3  ;;  %v1778_v25 = vpop.f32.mrf.mxu2 }
 0x511   : > { %v1847_v29 = vadd.f32 %v1827_v37, %v1774_v3  ;;  %v1779_v45 = vadd.f32 %v1778_v25, %v1705_v28 }
 0x513   : > { %v1860_v27 = vadd.f32 %v2537_v21, %v1847_v29  ;;  %v2538_v29 = vld [vmem:[%s3060_s6 + $0x3] ss:$0 sm:$0xff] }
 0x515   : > { %v1868_v40 = vmax.f32 %v1860_v27, 0.0 }
 0x516   : > { %v1707_v42 = vpop.f32.mrf.mxu1 }
 0x518   : > { %v1829_v32 = vpop.f32.mrf.mxu3  ;;  %v1780_v30 = vpop.f32.mrf.mxu2 }
 0x519   : > { %v1848_v48 = vadd.f32 %v1829_v32, %v1776_v31  ;;  %v1781_v47 = vadd.f32 %v1780_v30, %v1707_v42 }
 0x51b   : > { %v1861_v35 = vadd.f32 %v2537_v21, %v1848_v48 }
 0x51d   : > { %v1869_v41 = vmax.f32 %v1861_v35, 0.0 }
 0x51e   : > { %v1710_v1 = vpop.f32.mrf.mxu1 }
 0x51f   : > { %v1876_v43 = vpack.c.bf16 %v1869_v41, %v1868_v40 }
 0x520   : > { %v1832_v44 = vpop.f32.mrf.mxu3  ;;  %v1783_v46 = vpop.f32.mrf.mxu2 }
 0x521   : > { %2340 = vmatmul.msk.bf16.vlgmr.msra.gmra.mxu0 %vm486_vm3, %v1876_v43  ;;  %v1849_v54 = vadd.f32 %v1832_v44, %v1779_v45  ;;  %v1784_v63 = vadd.f32 %v1783_v46, %v1710_v1 }
 0x523   : > { %v1862_v50 = vadd.f32 %v2537_v21, %v1849_v54 }
 0x525   : > { %v1870_v11 = vmax.f32 %v1862_v50, 0.0 }
 0x526   : > { %v1712_v58 = vpop.f32.mrf.mxu1 }
 0x528   : > { %v1834_v49 = vpop.f32.mrf.mxu3  ;;  %v1785_v39 = vpop.f32.mrf.mxu2 }
 0x529   : > { %v1850_v53 = vadd.f32 %v1834_v49, %v1781_v47  ;;  %v1786_v4 = vadd.f32 %v1785_v39, %v1712_v58 }
 0x52b   : > { %v1863_v55 = vadd.f32 %v2537_v21, %v1850_v53 }
 0x52d   : > { %v1871_v56 = vmax.f32 %v1863_v55, 0.0 }
 0x52e   : > { %v1715_v26 = vpop.f32.mrf.mxu1 }
 0x52f   : > { %v1877_v57 = vpack.c.bf16 %v1871_v56, %v1870_v11 }
 0x530   : > { %v1837_v60 = vpop.f32.mrf.mxu3  ;;  %v1788_v7 = vpop.f32.mrf.mxu2 }
 0x531   : > { %2341 = vmatmul.msk.bf16.gmra.mxu0 %vm486_vm3, %v1877_v57  ;;  %v1851_v2 = vadd.f32 %v1837_v60, %v1784_v63  ;;  %v1789_v34 = vadd.f32 %v1788_v7, %v1715_v26 }
 0x533   : > { %v1864_v23 = vadd.f32 %v2537_v21, %v1851_v2 }
 0x535   : > { %v1872_v12 = vmax.f32 %v1864_v23, 0.0 }
 0x536   : > { %v1717_v8 = vpop.f32.mrf.mxu1 }
 0x538   : > { %v1839_v5 = vpop.f32.mrf.mxu3  ;;  %v1790_v18 = vpop.f32.mrf.mxu2 }
 0x539   : > { %v1852_v20 = vadd.f32 %v1839_v5, %v1786_v4  ;;  %v1791_v51 = vadd.f32 %v1790_v18, %v1717_v8 }
 0x53b   : > { %v1865_v38 = vadd.f32 %v2537_v21, %v1852_v20 }
 0x53d   : > { %v1873_v13 = vmax.f32 %v1865_v38, 0.0 }
 0x53f   : > { %v1878_v15 = vpack.c.bf16 %v1873_v13, %v1872_v12 }
 0x540   : > { %v1842_v16 = vpop.f32.mrf.mxu3 }
 0x541   : > { %2342 = vmatmul.msk.bf16.gmra.mxu0 %vm486_vm3, %v1878_v15  ;;  %v1853_v62 = vadd.f32 %v1842_v16, %v1789_v34 }
 0x543   : > { %v1866_v17 = vadd.f32 %v2537_v21, %v1853_v62 }
 0x545   : > { %v1874_v37 = vmax.f32 %v1866_v17, 0.0 }
 0x548   : > { %v1844_v19 = vpop.f32.mrf.mxu3 }
 0x549   : > { %v1854_v22 = vadd.f32 %v1844_v19, %v1791_v51 }
 0x54b   : > { %v1867_v10 = vadd.f32 %v2537_v21, %v1854_v22 }
 0x54d   : > { %v1875_v25 = vmax.f32 %v1867_v10, 0.0 }
 0x54f   : > { %v1879_v3 = vpack.c.bf16 %v1875_v25, %v1874_v37 }
 0x551   : > { %2343 = vmatmul.msk.bf16.gmra.mxu0 %vm486_vm3, %v1879_v3 }
 0x59e   : > { %v1923_v28 = vpop.f32.mrf.mxu0 }
 0x59f   : > { %v1924_v31 = vadd.f32 %v2538_v29, %v1923_v28 }
 0x5a1   : > { %v1943_v48 = vadd.f32 %v1924_v31, %v2942_v36 }
 0x5a6   : > { %v1925_v32 = vpop.f32.mrf.mxu0 }
 0x5a7   : > { %v1926_v27 = vadd.f32 %v2538_v29, %v1925_v32 }
 0x5a9   : > { %v1944_v35 = vadd.f32 %v1926_v27, %v2948_v24 }
 0x5ab   : > { %v1951_v30 = vpack.c.bf16 %v1944_v35, %v1943_v48 }
 0x5ad   : > { %2352 = vmatmul.msk.bf16.vlgmr.msra.gmra.mxu1 %vm486_vm3, %v1951_v30 }
 0x5ae   : > { %v1928_v21 = vpop.f32.mrf.mxu0 }
 0x5af   : > { %v1929_v40 = vadd.f32 %v2538_v29, %v1928_v21 }
 0x5b1   : > { %v1945_v43 = vadd.f32 %v1929_v40, %v2955_v33 }
 0x5b6   : > { %v1930_v41 = vpop.f32.mrf.mxu0 }
 0x5b7   : > { %v1931_v42 = vadd.f32 %v2538_v29, %v1930_v41 }
 0x5b9   : > { %v1946_v44 = vadd.f32 %v1931_v42, %v2962_v52 }
 0x5bb   : > { %v1952_v45 = vpack.c.bf16 %v1946_v44, %v1945_v43 }
 0x5bd   : > { %2353 = vmatmul.msk.bf16.gmra.mxu1 %vm486_vm3, %v1952_v45 }
 0x5be   : > { %v1933_v54 = vpop.f32.mrf.mxu0 }
 0x5bf   : > { %v1934_v46 = vadd.f32 %v2538_v29, %v1933_v54 }
 0x5c1   : > { %v1947_v24 = vadd.f32 %v1934_v46, %v2970_v61  ;;  %v2539_v61 = vld [vmem:[%s3062_s8] ss:$0 sm:$0xff] }
 0x5c6   : > { %v1935_v36 = vpop.f32.mrf.mxu0 }
 0x5c7   : > { %v1936_v47 = vadd.f32 %v2538_v29, %v1935_v36 }
 0x5c9   : > { %v1948_v1 = vadd.f32 %v1936_v47, %v2977_v0 }
 0x5cb   : > { %v1953_v49 = vpack.c.bf16 %v1948_v1, %v1947_v24 }
 0x5cd   : > { %2354 = vmatmul.msk.bf16.gmra.mxu1 %vm486_vm3, %v1953_v49 }
 0x5ce   : > { %v1938_v50 = vpop.f32.mrf.mxu0 }
 0x5cf   : > { %v1939_v53 = vadd.f32 %v2538_v29, %v1938_v50 }
 0x5d1   : > { %v1949_v52 = vadd.f32 %v1939_v53, %v2988_v9 }
 0x5d6   : > { %v1940_v33 = vpop.f32.mrf.mxu0 }
 0x5d7   : > { %v1941_v55 = vadd.f32 %v2538_v29, %v1940_v33 }
 0x5d9   : > { %v1950_v11 = vadd.f32 %v1941_v55, %v2995_v14 }
 0x5db   : > { %v1954_v56 = vpack.c.bf16 %v1950_v11, %v1949_v52 }
 0x5dd   : > { %2355 = vmatmul.msk.bf16.gmra.mxu1 %vm486_vm3, %v1954_v56 }
 0x62a   : > { %v1996_v0 = vpop.f32.mrf.mxu1 }
 0x62b   : > { %v1997_v57 = vadd.f32 %v2539_v61, %v1996_v0 }
 0x62d   : > { %2016 = vst.msk [vmem:[%s349_s10] sm:$0xff] %vm373_vm1, %v1997_v57 }
 0x632   : > { %v1998_v39 = vpop.f32.mrf.mxu1 }
 0x633   : > { %v1999_v9 = vadd.f32 %v2539_v61, %v1998_v39 }
 0x635   : > { %2017 = vst.msk [vmem:[%s349_s10 + $0x8] sm:$0xff] %vm373_vm1, %v1999_v9 }
 0x63a   : > { %v2001_v14 = vpop.f32.mrf.mxu1 }
 0x63b   : > { %v2002_v60 = vadd.f32 %v2539_v61, %v2001_v14 }
 0x63d   : > { %2018 = vst.msk [vmem:[%s349_s10 + $0x10] sm:$0xff] %vm373_vm1, %v2002_v60 }
 0x642   : > { %v2003_v6 = vpop.f32.mrf.mxu1 }
 0x643   : > { %v2004_v58 = vadd.f32 %v2539_v61, %v2003_v6 }
 0x645   : > { %2019 = vst.msk [vmem:[%s349_s10 + $0x18] sm:$0xff] %vm373_vm1, %v2004_v58 }
 0x64a   : > { %v2006_v63 = vpop.f32.mrf.mxu1 }
 0x64b   : > { %v2007_v59 = vadd.f32 %v2539_v61, %v2006_v63 }
 0x64d   : > { %2020 = vst.msk [vmem:[%s349_s10 + $0x20] sm:$0xff] %vm373_vm1, %v2007_v59 }
 0x652   : > { %v2008_v2 = vpop.f32.mrf.mxu1 }
 0x653   : > { %v2009_v4 = vadd.f32 %v2539_v61, %v2008_v2 }
 0x655   : > { %2021 = vst.msk [vmem:[%s349_s10 + $0x28] sm:$0xff] %vm373_vm1, %v2009_v4 }
 0x65a   : > { %v2011_v5 = vpop.f32.mrf.mxu1 }
 0x65b   : > { %v2012_v23 = vadd.f32 %v2539_v61, %v2011_v5 }
 0x65d   : > { %2022 = vst.msk [vmem:[%s349_s10 + $0x30] sm:$0xff] %vm373_vm1, %v2012_v23 }
 0x662   : > { %v2013_v20 = vpop.f32.mrf.mxu1 }
 0x663   : > { %v2014_v7 = vadd.f32 %v2539_v61, %v2013_v20 }
 0x665   : > { %2023 = vst.msk [vmem:[%s349_s10 + $0x38] sm:$0xff] %vm373_vm1, %v2014_v7 }
 0x666 PF: > { %s20_s30 = sadd.s32 1, %s2580_s30  }
 0x667   : > { %p17_p7 = scmp.ge.s32.totalorder %s20_s30, 4  }
 0x669   :  { %19 = sbr.rel (!%p17_p7) target bundleno = 1 (0x1), region = 111 }
 0x66e   :  { %2045 = vsyncpa [#allocation4], 1 }
 0x66f   :  { %2047 = vsyncpa [#allocation4 + $0x1], 1 }

</bundles_post_ra>
